<compile_context>
chip_gen: v7x
topology: tpu7x:2x2x1
jax: 0.10.0
libtpu: 0.0.40
codegen_flags: <defaults>
</compile_context>

<pallas_src>
import functools

import numpy as np
import jax
import jax.numpy as jnp
from jax.experimental import pallas as pl
from jax.experimental.pallas import tpu as pltpu


def _choose_tile_b(B, D, itemsize, budget_bytes):
    """Largest batch tile (multiple of 8 that divides B, or B itself) whose
    double-buffered working set for the six (tile_B, D) inputs fits budget."""
    per_row = 6 * D * itemsize * 2          # 6 inputs, double-buffered
    tile = int(budget_bytes // max(per_row, 1))
    tile = max(8, (tile // 8) * 8)
    tile = min(tile, B)
    while tile > 8 and B % tile != 0:
        tile -= 8
    if tile <= 0 or B % tile != 0:
        tile = B                            # full-extent block is always legal
    return tile


def _make_dino_kernel(inv_student_temp, gamma, center_momentum, batch):
    inv_student_temp = float(inv_student_temp)
    gamma = float(gamma)
    m = float(center_momentum)
    inv_batch = 1.0 / float(batch)

    def kernel(itt_ref,                      # (1,) f32 in SMEM: 1/teacher_temp
               s1_ref, s2_ref, sd_ref,       # student outputs (tile_B, D)
               t1_ref, t2_ref, td_ref,       # teacher outputs (tile_B, D)
               c_ref, dc_ref,                # centers (1, D)
               loss_ref, nc_ref, ndc_ref,    # outputs (1,1), (1,D), (1,D)
               loss_acc, sum12_acc, sumd_acc):  # VMEM accumulators
        step = pl.program_id(0)

        @pl.when(step == 0)
        def _init():
            loss_acc[...] = jnp.zeros_like(loss_acc)
            sum12_acc[...] = jnp.zeros_like(sum12_acc)
            sumd_acc[...] = jnp.zeros_like(sumd_acc)

        inv_tt = itt_ref[0]                             # scalar f32 from SMEM

        center = c_ref[...].astype(jnp.float32)         # (1, D)
        diff_center = dc_ref[...].astype(jnp.float32)   # (1, D)

        # raw teacher views (also needed for the center EMA sums)
        t1 = t1_ref[...].astype(jnp.float32)
        t2 = t2_ref[...].astype(jnp.float32)
        td = td_ref[...].astype(jnp.float32)

        # centered teacher views: computed once, reused for softmax AND cosine
        a = t1 - center
        b = t2 - center
        d = td - diff_center

        def softmax(x):
            e = jnp.exp(x - jnp.max(x, axis=-1, keepdims=True))
            # reciprocal on the (tile_B, 1) denominator + broadcast multiply
            return e * (1.0 / jnp.sum(e, axis=-1, keepdims=True))

        def cross_entropy(x_ref, q):
            # -sum(log_softmax(x / student_temp) * q)  with  sum(q) == 1
            #   = lse(z) - sum(z * q)   (saves a (tile_B, D) broadcast-sub)
            z = x_ref[...].astype(jnp.float32) * inv_student_temp
            z = z - jnp.max(z, axis=-1, keepdims=True)
            lse = jnp.log(jnp.sum(jnp.exp(z), axis=-1, keepdims=True))
            return lse - jnp.sum(z * q, axis=-1, keepdims=True)

        # teacher (centered, sharpened) probs
        q1 = softmax(a * inv_tt)
        q2 = softmax(b * inv_tt)
        qd = softmax(d * inv_tt)

        # per-sample cross-entropy terms (tile_B, 1)
        L_u = 0.5 * (cross_entropy(s1_ref, q2) + cross_entropy(s2_ref, q1))
        L_d = cross_entropy(sd_ref, qd)

        # cosine similarity between centered teacher views (torch eps = 1e-8)
        ab = jnp.sum(a * b, axis=-1, keepdims=True)
        aa = jnp.sum(a * a, axis=-1, keepdims=True)
        bb = jnp.sum(b * b, axis=-1, keepdims=True)
        na = jnp.maximum(jnp.sqrt(aa), 1e-8)
        nb = jnp.maximum(jnp.sqrt(bb), 1e-8)
        sim = ab * (1.0 / (na * nb))

        h = (1.0 + sim) * 0.5
        if gamma == 2.0:                      # default: single multiply
            psi = h * h
        elif gamma == 1.0:
            psi = h
        elif gamma == float(int(gamma)) and 0.0 < gamma <= 8.0:
            psi = h
            for _ in range(int(gamma) - 1):
                psi = psi * h
        else:
            psi = h ** gamma                  # general (EUP transcendentals)

        per_sample = psi * L_u + (1.0 - psi) * L_d          # (tile_B, 1)

        # accumulate partial reductions for this tile
        loss_acc[...] += jnp.sum(per_sample, keepdims=True)           # (1,1)
        sum12_acc[...] += jnp.sum(t1 + t2, axis=0, keepdims=True)     # (1,D)
        sumd_acc[...] += jnp.sum(td, axis=0, keepdims=True)           # (1,D)

        @pl.when(step == pl.num_programs(0) - 1)
        def _finalize():
            loss_ref[...] = (loss_acc[...] * inv_batch).astype(loss_ref.dtype)
            batch_center = sum12_acc[...] * (0.5 * inv_batch)
            diff_batch_center = sumd_acc[...] * inv_batch
            nc_ref[...] = (center * m
                           + batch_center * (1.0 - m)).astype(nc_ref.dtype)
            ndc_ref[...] = (diff_center * m
                            + diff_batch_center * (1.0 - m)).astype(ndc_ref.dtype)

    return kernel


@functools.lru_cache(maxsize=64)
def _build_dino_call(B, D, in_dtype_name, student_temp, gamma,
                     center_momentum, tile_b_override=None):
    in_dtype = jnp.dtype(in_dtype_name)
    itemsize = in_dtype.itemsize

    # Per-generation VMEM sizing: ~48 MiB scoped limit on v7x (64 MiB phys),
    # ~96 MiB on v5e/v6e (128 MiB phys).
    try:
        vmem_cap = int(pltpu.get_tpu_info().vmem_capacity_bytes)
    except Exception:
        vmem_cap = 64 << 20                   # conservative (v7x per-TC)
    vmem_limit = int(min(3 * vmem_cap // 4, 100 << 20))
    tile_budget = max(vmem_limit - (8 << 20), 8 << 20)

    tile_b = (tile_b_override if tile_b_override is not None
              else _choose_tile_b(B, D, itemsize, tile_budget))
    assert B % tile_b == 0
    grid = (B // tile_b,)

    kernel = _make_dino_kernel(1.0 / student_temp, gamma, center_momentum, B)

    tiled = lambda i: (i, 0)
    fixed = lambda i: (0, 0)

    in_specs = ([pl.BlockSpec(memory_space=pltpu.MemorySpace.SMEM)]  # 1/temp
                + [pl.BlockSpec((tile_b, D), tiled)] * 6
                + [pl.BlockSpec((1, D), fixed)] * 2)
    out_specs = (pl.BlockSpec((1, 1), fixed),
                 pl.BlockSpec((1, D), fixed),
                 pl.BlockSpec((1, D), fixed))

    cost = pl.CostEstimate(
        flops=40 * B * D,
        transcendentals=6 * B * D,
        bytes_accessed=6 * B * D * itemsize + 4 * D * 4 + 2 * D * 4 + 8,
    )

    call = pl.pallas_call(
        kernel,
        out_shape=(jax.ShapeDtypeStruct((1, 1), jnp.float32),
                   jax.ShapeDtypeStruct((1, D), jnp.float32),
                   jax.ShapeDtypeStruct((1, D), jnp.float32)),
        grid=grid,
        in_specs=in_specs,
        out_specs=out_specs,
        scratch_shapes=[pltpu.VMEM((1, 1), jnp.float32),
                        pltpu.VMEM((1, D), jnp.float32),
                        pltpu.VMEM((1, D), jnp.float32)],
        compiler_params=pltpu.CompilerParams(
            dimension_semantics=("arbitrary",),    # batch axis is a reduction
            vmem_limit_bytes=vmem_limit),
        cost_estimate=cost,
    )

    def fn(inv_tt, s1, s2, sd, t1, t2, td, center, diff_center):
        loss, new_c, new_dc = call(inv_tt, s1, s2, sd, t1, t2, td,
                                   center, diff_center)
        return loss[0, 0], new_c, new_dc

    # TODO(synk): on v7x, a further ~2x is available by splitting the batch
    # reduction across the two TensorCores (parallel leading grid axis with
    # per-core partial sums combined in the wrapper).
    return jax.jit(fn)


class ModifiedDINOLoss:
    """JAX/Pallas port of the PyTorch ModifiedDINOLoss (functional state)."""

    def __init__(self, out_dim, warmup_teacher_temp, teacher_temp,
                 warmup_teacher_temp_epochs, nepochs,
                 student_temp=0.1, center_momentum=0.9, gamma=2.0,
                 tile_b=None):
        self.out_dim = out_dim
        self.student_temp = float(student_temp)
        self.center_momentum = float(center_momentum)
        self.gamma = float(gamma)
        self.tile_b = tile_b
        # buffers (zeros, as in register_buffer)
        self.center = jnp.zeros((1, out_dim), jnp.float32)
        self.diff_center = jnp.zeros((1, out_dim), jnp.float32)
        self.teacher_temp_schedule = np.concatenate((
            np.linspace(warmup_teacher_temp, teacher_temp,
                        warmup_teacher_temp_epochs),
            np.ones(nepochs - warmup_teacher_temp_epochs) * teacher_temp,
        ))

    def __call__(self, student_t1, student_t2, student_diff,
                 teacher_t1, teacher_t2, teacher_diff, epoch):
        B, D = student_t1.shape
        temp = float(self.teacher_temp_schedule[epoch])
        fn = _build_dino_call(B, D, jnp.dtype(student_t1.dtype).name,
                              self.student_temp, self.gamma,
                              self.center_momentum, self.tile_b)
        inv_tt = jnp.asarray([1.0 / temp], jnp.float32)   # runtime scalar -> no
        # recompile when the teacher-temp schedule changes across epochs.
        loss, new_center, new_diff_center = fn(
            inv_tt,
            student_t1, student_t2, student_diff,
            teacher_t1, teacher_t2, teacher_diff,
            self.center, self.diff_center)

        # stateful buffer updates (mirrors torch in-place buffer mutation)
        self.center = new_center
        self.diff_center = new_diff_center
        return loss


def _reference_loss(s1, s2, sd, t1, t2, td, center, diff_center,
                    student_temp, temp, gamma):
    """Plain-JAX reference for verification."""
    ls = lambda x: jax.nn.log_softmax(x, axis=-1)
    sm = lambda x: jax.nn.softmax(x, axis=-1)
    L_u = -0.5 * (ls(s1 / student_temp) * sm((t2 - center) / temp)
                  + ls(s2 / student_temp) * sm((t1 - center) / temp)).sum(-1)
    L_d = -(ls(sd / student_temp) * sm((td - diff_center) / temp)).sum(-1)
    a, b = t1 - center, t2 - center
    na = jnp.maximum(jnp.linalg.norm(a, axis=-1), 1e-8)
    nb = jnp.maximum(jnp.linalg.norm(b, axis=-1), 1e-8)
    sim = (a * b).sum(-1) / (na * nb)
    psi = ((1 + sim) / 2) ** gamma
    return (psi * L_u + (1 - psi) * L_d).mean()


if __name__ == "__main__":
    # Small shapes; tile_b=8 with B=16 forces a 2-step grid so the accumulator
    # (init / accumulate / finalize) path is exercised.
    B, D = 16, 256
    key = jax.random.PRNGKey(0)
    ks = jax.random.split(key, 6)
    s_t1 = jax.random.normal(ks[0], (B, D), jnp.float32)
    s_t2 = jax.random.normal(ks[1], (B, D), jnp.float32)
    s_df = jax.random.normal(ks[2], (B, D), jnp.float32)
    t_t1 = jax.random.normal(ks[3], (B, D), jnp.float32)
    t_t2 = jax.random.normal(ks[4], (B, D), jnp.float32)
    t_df = jax.random.normal(ks[5], (B, D), jnp.float32)

    loss_mod = ModifiedDINOLoss(out_dim=D, warmup_teacher_temp=0.04,
                                teacher_temp=0.07,
                                warmup_teacher_temp_epochs=5, nepochs=10,
                                student_temp=0.1, center_momentum=0.9,
                                gamma=2.0, tile_b=8)
    epoch = 3
    init_center = loss_mod.center
    init_diff_center = loss_mod.diff_center

    loss = loss_mod(s_t1, s_t2, s_df, t_t1, t_t2, t_df, epoch)
    jax.block_until_ready(loss)
    jax.block_until_ready(loss_mod.center)
    jax.block_until_ready(loss_mod.diff_center)

    # correctness check against plain-JAX reference
    temp = float(loss_mod.teacher_temp_schedule[epoch])
    ref = _reference_loss(s_t1, s_t2, s_df, t_t1, t_t2, t_df,
                          init_center, init_diff_center, 0.1, temp, 2.0)
    assert jnp.allclose(loss, ref, rtol=1e-5, atol=1e-5), (loss, ref)

    ref_center = init_center * 0.9 + 0.1 * jnp.concatenate(
        (t_t1, t_t2), axis=0).sum(0, keepdims=True) / (2 * B)
    ref_diff_center = init_diff_center * 0.9 + 0.1 * t_df.sum(
        0, keepdims=True) / B
    assert jnp.allclose(loss_mod.center, ref_center, rtol=1e-5, atol=1e-5)
    assert jnp.allclose(loss_mod.diff_center, ref_diff_center,
                        rtol=1e-5, atol=1e-5)

    print("KERNEL_OK")
</pallas_src>

<mosaic_0001>
module attributes {stable_mosaic.version = 11 : i64} {
  func.func @kernel(%arg0: i32, %arg1: memref<1xf32, #tpu.memory_space<smem>>, %arg2: memref<8x256xf32, #tpu.memory_space<vmem>>, %arg3: memref<8x256xf32, #tpu.memory_space<vmem>>, %arg4: memref<8x256xf32, #tpu.memory_space<vmem>>, %arg5: memref<8x256xf32, #tpu.memory_space<vmem>>, %arg6: memref<8x256xf32, #tpu.memory_space<vmem>>, %arg7: memref<8x256xf32, #tpu.memory_space<vmem>>, %arg8: memref<1x256xf32, #tpu.memory_space<vmem>>, %arg9: memref<1x256xf32, #tpu.memory_space<vmem>>, %arg10: memref<1x1xf32, #tpu.memory_space<vmem>>, %arg11: memref<1x256xf32, #tpu.memory_space<vmem>>, %arg12: memref<1x256xf32, #tpu.memory_space<vmem>>, %arg13: memref<1x1xf32, #tpu.memory_space<vmem>>, %arg14: memref<1x256xf32, #tpu.memory_space<vmem>>, %arg15: memref<1x256xf32, #tpu.memory_space<vmem>>) attributes {dimension_semantics = [#tpu.dimension_semantics<arbitrary>], iteration_bounds = array<i64: 2>, scalar_prefetch = 0 : i64, scratch_operands = 3 : i64, tpu.core_type = #tpu.core_type<tc>, window_params = [{transform_indices = @transform_0, window_bounds = array<i64: 1>}, {transform_indices = @transform_1, window_bounds = array<i64: 8, 256>}, {transform_indices = @transform_2, window_bounds = array<i64: 8, 256>}, {transform_indices = @transform_3, window_bounds = array<i64: 8, 256>}, {transform_indices = @transform_4, window_bounds = array<i64: 8, 256>}, {transform_indices = @transform_5, window_bounds = array<i64: 8, 256>}, {transform_indices = @transform_6, window_bounds = array<i64: 8, 256>}, {pipeline_mode = #tpu.pipeline_mode<synchronous>, transform_indices = @transform_7, window_bounds = array<i64: 1, 256>}, {pipeline_mode = #tpu.pipeline_mode<synchronous>, transform_indices = @transform_8, window_bounds = array<i64: 1, 256>}, {pipeline_mode = #tpu.pipeline_mode<synchronous>, transform_indices = @transform_9, window_bounds = array<i64: 1, 1>}, {pipeline_mode = #tpu.pipeline_mode<synchronous>, transform_indices = @transform_10, window_bounds = array<i64: 1, 256>}, {pipeline_mode = #tpu.pipeline_mode<synchronous>, transform_indices = @transform_11, window_bounds = array<i64: 1, 256>}]} {
    %c0_i32 = arith.constant 0 : i32
    %0 = arith.cmpi eq, %arg0, %c0_i32 : i32
    %1 = arith.extui %0 : i1 to i32
    %c0_i32_0 = arith.constant 0 : i32
    %2 = arith.cmpi ne, %1, %c0_i32_0 : i32
    scf.if %2 {
      %cst_63 = arith.constant 0.000000e+00 : f32
      %153 = vector.broadcast %cst_63 : f32 to vector<1x1xf32>
      %c0_64 = arith.constant 0 : index
      %c0_65 = arith.constant 0 : index
      %154 = vector.load %arg13[%c0_64, %c0_65] : memref<1x1xf32, #tpu.memory_space<vmem>>, vector<1x1xf32>
      tpu.vector_store %arg13[%c0_64, %c0_65], %153 {strides = array<i32>} : memref<1x1xf32, #tpu.memory_space<vmem>>, vector<1x1xf32>,
      %cst_66 = arith.constant 0.000000e+00 : f32
      %155 = vector.broadcast %cst_66 : f32 to vector<1x256xf32>
      %c0_67 = arith.constant 0 : index
      %c0_68 = arith.constant 0 : index
      %156 = vector.load %arg14[%c0_67, %c0_68] : memref<1x256xf32, #tpu.memory_space<vmem>>, vector<1x256xf32>
      tpu.vector_store %arg14[%c0_67, %c0_68], %155 {strides = array<i32>} : memref<1x256xf32, #tpu.memory_space<vmem>>, vector<1x256xf32>,
      %cst_69 = arith.constant 0.000000e+00 : f32
      %157 = vector.broadcast %cst_69 : f32 to vector<1x256xf32>
      %c0_70 = arith.constant 0 : index
      %c0_71 = arith.constant 0 : index
      %158 = vector.load %arg15[%c0_70, %c0_71] : memref<1x256xf32, #tpu.memory_space<vmem>>, vector<1x256xf32>
      tpu.vector_store %arg15[%c0_70, %c0_71], %157 {strides = array<i32>} : memref<1x256xf32, #tpu.memory_space<vmem>>, vector<1x256xf32>,
    } else {
    }
    %c0 = arith.constant 0 : index
    %3 = memref.load %arg1[%c0] : memref<1xf32, #tpu.memory_space<smem>>
    %c0_1 = arith.constant 0 : index
    %c0_2 = arith.constant 0 : index
    %4 = vector.load %arg8[%c0_1, %c0_2] : memref<1x256xf32, #tpu.memory_space<vmem>>, vector<1x256xf32>
    %c0_3 = arith.constant 0 : index
    %c0_4 = arith.constant 0 : index
    %5 = vector.load %arg9[%c0_3, %c0_4] : memref<1x256xf32, #tpu.memory_space<vmem>>, vector<1x256xf32>
    %c0_5 = arith.constant 0 : index
    %c0_6 = arith.constant 0 : index
    %6 = vector.load %arg5[%c0_5, %c0_6] : memref<8x256xf32, #tpu.memory_space<vmem>>, vector<8x256xf32>
    %c0_7 = arith.constant 0 : index
    %c0_8 = arith.constant 0 : index
    %7 = vector.load %arg6[%c0_7, %c0_8] : memref<8x256xf32, #tpu.memory_space<vmem>>, vector<8x256xf32>
    %c0_9 = arith.constant 0 : index
    %c0_10 = arith.constant 0 : index
    %8 = vector.load %arg7[%c0_9, %c0_10] : memref<8x256xf32, #tpu.memory_space<vmem>>, vector<8x256xf32>
    %9 = vector.broadcast %4 : vector<1x256xf32> to vector<8x256xf32>
    %10 = arith.subf %6, %9 : vector<8x256xf32>
    %11 = vector.broadcast %4 : vector<1x256xf32> to vector<8x256xf32>
    %12 = arith.subf %7, %11 : vector<8x256xf32>
    %13 = vector.broadcast %5 : vector<1x256xf32> to vector<8x256xf32>
    %14 = arith.subf %8, %13 : vector<8x256xf32>
    %15 = vector.broadcast %3 : f32 to vector<8x256xf32>
    %16 = arith.mulf %10, %15 : vector<8x256xf32>
    %cst = arith.constant dense<0xFF800000> : vector<8xf32>
    %17 = vector.multi_reduction <maximumf>, %16, %cst [1] : vector<8x256xf32> to vector<8xf32>
    %18 = vector.shape_cast %17 : vector<8xf32> to vector<8x1xf32>
    %19 = vector.broadcast %18 : vector<8x1xf32> to vector<8x256xf32>
    %20 = arith.subf %16, %19 : vector<8x256xf32>
    %21 = math.exp %20 : vector<8x256xf32>
    %cst_11 = arith.constant dense<0.000000e+00> : vector<8xf32>
    %22 = vector.multi_reduction <add>, %21, %cst_11 [1] : vector<8x256xf32> to vector<8xf32>
    %23 = vector.shape_cast %22 : vector<8xf32> to vector<8x1xf32>
    %cst_12 = arith.constant 1.000000e+00 : f32
    %24 = vector.broadcast %cst_12 : f32 to vector<8x1xf32>
    %25 = arith.divf %24, %23 : vector<8x1xf32>
    %26 = vector.broadcast %25 : vector<8x1xf32> to vector<8x256xf32>
    %27 = arith.mulf %21, %26 : vector<8x256xf32>
    %28 = vector.broadcast %3 : f32 to vector<8x256xf32>
    %29 = arith.mulf %12, %28 : vector<8x256xf32>
    %cst_13 = arith.constant dense<0xFF800000> : vector<8xf32>
    %30 = vector.multi_reduction <maximumf>, %29, %cst_13 [1] : vector<8x256xf32> to vector<8xf32>
    %31 = vector.shape_cast %30 : vector<8xf32> to vector<8x1xf32>
    %32 = vector.broadcast %31 : vector<8x1xf32> to vector<8x256xf32>
    %33 = arith.subf %29, %32 : vector<8x256xf32>
    %34 = math.exp %33 : vector<8x256xf32>
    %cst_14 = arith.constant dense<0.000000e+00> : vector<8xf32>
    %35 = vector.multi_reduction <add>, %34, %cst_14 [1] : vector<8x256xf32> to vector<8xf32>
    %36 = vector.shape_cast %35 : vector<8xf32> to vector<8x1xf32>
    %cst_15 = arith.constant 1.000000e+00 : f32
    %37 = vector.broadcast %cst_15 : f32 to vector<8x1xf32>
    %38 = arith.divf %37, %36 : vector<8x1xf32>
    %39 = vector.broadcast %38 : vector<8x1xf32> to vector<8x256xf32>
    %40 = arith.mulf %34, %39 : vector<8x256xf32>
    %41 = vector.broadcast %3 : f32 to vector<8x256xf32>
    %42 = arith.mulf %14, %41 : vector<8x256xf32>
    %cst_16 = arith.constant dense<0xFF800000> : vector<8xf32>
    %43 = vector.multi_reduction <maximumf>, %42, %cst_16 [1] : vector<8x256xf32> to vector<8xf32>
    %44 = vector.shape_cast %43 : vector<8xf32> to vector<8x1xf32>
    %45 = vector.broadcast %44 : vector<8x1xf32> to vector<8x256xf32>
    %46 = arith.subf %42, %45 : vector<8x256xf32>
    %47 = math.exp %46 : vector<8x256xf32>
    %cst_17 = arith.constant dense<0.000000e+00> : vector<8xf32>
    %48 = vector.multi_reduction <add>, %47, %cst_17 [1] : vector<8x256xf32> to vector<8xf32>
    %49 = vector.shape_cast %48 : vector<8xf32> to vector<8x1xf32>
    %cst_18 = arith.constant 1.000000e+00 : f32
    %50 = vector.broadcast %cst_18 : f32 to vector<8x1xf32>
    %51 = arith.divf %50, %49 : vector<8x1xf32>
    %52 = vector.broadcast %51 : vector<8x1xf32> to vector<8x256xf32>
    %53 = arith.mulf %47, %52 : vector<8x256xf32>
    %c0_19 = arith.constant 0 : index
    %c0_20 = arith.constant 0 : index
    %54 = vector.load %arg2[%c0_19, %c0_20] : memref<8x256xf32, #tpu.memory_space<vmem>>, vector<8x256xf32>
    %cst_21 = arith.constant 1.000000e+01 : f32
    %55 = vector.broadcast %cst_21 : f32 to vector<8x256xf32>
    %56 = arith.mulf %54, %55 : vector<8x256xf32>
    %cst_22 = arith.constant dense<0xFF800000> : vector<8xf32>
    %57 = vector.multi_reduction <maximumf>, %56, %cst_22 [1] : vector<8x256xf32> to vector<8xf32>
    %58 = vector.shape_cast %57 : vector<8xf32> to vector<8x1xf32>
    %59 = vector.broadcast %58 : vector<8x1xf32> to vector<8x256xf32>
    %60 = arith.subf %56, %59 : vector<8x256xf32>
    %61 = math.exp %60 : vector<8x256xf32>
    %cst_23 = arith.constant dense<0.000000e+00> : vector<8xf32>
    %62 = vector.multi_reduction <add>, %61, %cst_23 [1] : vector<8x256xf32> to vector<8xf32>
    %63 = vector.shape_cast %62 : vector<8xf32> to vector<8x1xf32>
    %64 = math.log %63 : vector<8x1xf32>
    %65 = arith.mulf %60, %40 : vector<8x256xf32>
    %cst_24 = arith.constant dense<0.000000e+00> : vector<8xf32>
    %66 = vector.multi_reduction <add>, %65, %cst_24 [1] : vector<8x256xf32> to vector<8xf32>
    %67 = vector.shape_cast %66 : vector<8xf32> to vector<8x1xf32>
    %68 = arith.subf %64, %67 : vector<8x1xf32>
    %c0_25 = arith.constant 0 : index
    %c0_26 = arith.constant 0 : index
    %69 = vector.load %arg3[%c0_25, %c0_26] : memref<8x256xf32, #tpu.memory_space<vmem>>, vector<8x256xf32>
    %cst_27 = arith.constant 1.000000e+01 : f32
    %70 = vector.broadcast %cst_27 : f32 to vector<8x256xf32>
    %71 = arith.mulf %69, %70 : vector<8x256xf32>
    %cst_28 = arith.constant dense<0xFF800000> : vector<8xf32>
    %72 = vector.multi_reduction <maximumf>, %71, %cst_28 [1] : vector<8x256xf32> to vector<8xf32>
    %73 = vector.shape_cast %72 : vector<8xf32> to vector<8x1xf32>
    %74 = vector.broadcast %73 : vector<8x1xf32> to vector<8x256xf32>
    %75 = arith.subf %71, %74 : vector<8x256xf32>
    %76 = math.exp %75 : vector<8x256xf32>
    %cst_29 = arith.constant dense<0.000000e+00> : vector<8xf32>
    %77 = vector.multi_reduction <add>, %76, %cst_29 [1] : vector<8x256xf32> to vector<8xf32>
    %78 = vector.shape_cast %77 : vector<8xf32> to vector<8x1xf32>
    %79 = math.log %78 : vector<8x1xf32>
    %80 = arith.mulf %75, %27 : vector<8x256xf32>
    %cst_30 = arith.constant dense<0.000000e+00> : vector<8xf32>
    %81 = vector.multi_reduction <add>, %80, %cst_30 [1] : vector<8x256xf32> to vector<8xf32>
    %82 = vector.shape_cast %81 : vector<8xf32> to vector<8x1xf32>
    %83 = arith.subf %79, %82 : vector<8x1xf32>
    %84 = arith.addf %68, %83 : vector<8x1xf32>
    %cst_31 = arith.constant 5.000000e-01 : f32
    %85 = vector.broadcast %cst_31 : f32 to vector<8x1xf32>
    %86 = arith.mulf %85, %84 : vector<8x1xf32>
    %c0_32 = arith.constant 0 : index
    %c0_33 = arith.constant 0 : index
    %87 = vector.load %arg4[%c0_32, %c0_33] : memref<8x256xf32, #tpu.memory_space<vmem>>, vector<8x256xf32>
    %cst_34 = arith.constant 1.000000e+01 : f32
    %88 = vector.broadcast %cst_34 : f32 to vector<8x256xf32>
    %89 = arith.mulf %87, %88 : vector<8x256xf32>
    %cst_35 = arith.constant dense<0xFF800000> : vector<8xf32>
    %90 = vector.multi_reduction <maximumf>, %89, %cst_35 [1] : vector<8x256xf32> to vector<8xf32>
    %91 = vector.shape_cast %90 : vector<8xf32> to vector<8x1xf32>
    %92 = vector.broadcast %91 : vector<8x1xf32> to vector<8x256xf32>
    %93 = arith.subf %89, %92 : vector<8x256xf32>
    %94 = math.exp %93 : vector<8x256xf32>
    %cst_36 = arith.constant dense<0.000000e+00> : vector<8xf32>
    %95 = vector.multi_reduction <add>, %94, %cst_36 [1] : vector<8x256xf32> to vector<8xf32>
    %96 = vector.shape_cast %95 : vector<8xf32> to vector<8x1xf32>
    %97 = math.log %96 : vector<8x1xf32>
    %98 = arith.mulf %93, %53 : vector<8x256xf32>
    %cst_37 = arith.constant dense<0.000000e+00> : vector<8xf32>
    %99 = vector.multi_reduction <add>, %98, %cst_37 [1] : vector<8x256xf32> to vector<8xf32>
    %100 = vector.shape_cast %99 : vector<8xf32> to vector<8x1xf32>
    %101 = arith.subf %97, %100 : vector<8x1xf32>
    %102 = arith.mulf %10, %12 : vector<8x256xf32>
    %cst_38 = arith.constant dense<0.000000e+00> : vector<8xf32>
    %103 = vector.multi_reduction <add>, %102, %cst_38 [1] : vector<8x256xf32> to vector<8xf32>
    %104 = vector.shape_cast %103 : vector<8xf32> to vector<8x1xf32>
    %105 = arith.mulf %10, %10 : vector<8x256xf32>
    %cst_39 = arith.constant dense<0.000000e+00> : vector<8xf32>
    %106 = vector.multi_reduction <add>, %105, %cst_39 [1] : vector<8x256xf32> to vector<8xf32>
    %107 = vector.shape_cast %106 : vector<8xf32> to vector<8x1xf32>
    %108 = arith.mulf %12, %12 : vector<8x256xf32>
    %cst_40 = arith.constant dense<0.000000e+00> : vector<8xf32>
    %109 = vector.multi_reduction <add>, %108, %cst_40 [1] : vector<8x256xf32> to vector<8xf32>
    %110 = vector.shape_cast %109 : vector<8xf32> to vector<8x1xf32>
    %111 = math.sqrt %107 : vector<8x1xf32>
    %cst_41 = arith.constant 9.99999993E-9 : f32
    %112 = vector.broadcast %cst_41 : f32 to vector<8x1xf32>
    %113 = arith.maximumf %111, %112 : vector<8x1xf32>
    %114 = math.sqrt %110 : vector<8x1xf32>
    %cst_42 = arith.constant 9.99999993E-9 : f32
    %115 = vector.broadcast %cst_42 : f32 to vector<8x1xf32>
    %116 = arith.maximumf %114, %115 : vector<8x1xf32>
    %117 = arith.mulf %113, %116 : vector<8x1xf32>
    %cst_43 = arith.constant 1.000000e+00 : f32
    %118 = vector.broadcast %cst_43 : f32 to vector<8x1xf32>
    %119 = arith.divf %118, %117 : vector<8x1xf32>
    %120 = arith.mulf %104, %119 : vector<8x1xf32>
    %cst_44 = arith.constant 1.000000e+00 : f32
    %121 = vector.broadcast %cst_44 : f32 to vector<8x1xf32>
    %122 = arith.addf %121, %120 : vector<8x1xf32>
    %cst_45 = arith.constant 5.000000e-01 : f32
    %123 = vector.broadcast %cst_45 : f32 to vector<8x1xf32>
    %124 = arith.mulf %122, %123 : vector<8x1xf32>
    %125 = arith.mulf %124, %124 : vector<8x1xf32>
    %126 = arith.mulf %125, %86 : vector<8x1xf32>
    %cst_46 = arith.constant 1.000000e+00 : f32
    %127 = vector.broadcast %cst_46 : f32 to vector<8x1xf32>
    %128 = arith.subf %127, %125 : vector<8x1xf32>
    %129 = arith.mulf %128, %101 : vector<8x1xf32>
    %130 = arith.addf %126, %129 : vector<8x1xf32>
    %c0_47 = arith.constant 0 : index
    %c0_48 = arith.constant 0 : index
    %131 = vector.load %arg13[%c0_47, %c0_48] : memref<1x1xf32, #tpu.memory_space<vmem>>, vector<1x1xf32>
    %132 = vector.shape_cast %130 : vector<8x1xf32> to vector<1x8x1xf32>
    %cst_49 = arith.constant dense<0.000000e+00> : vector<1xf32>
    %133 = vector.multi_reduction <add>, %132, %cst_49 [1, 2] : vector<1x8x1xf32> to vector<1xf32>
    %134 = vector.shape_cast %133 : vector<1xf32> to vector<1x1x1xf32>
    %135 = vector.extract %134[0, 0, 0] : f32 from vector<1x1x1xf32>
    %136 = vector.broadcast %135 : f32 to vector<1x1xf32>
    %137 = arith.addf %131, %136 : vector<1x1xf32>
    %c0_50 = arith.constant 0 : index
    %c0_51 = arith.constant 0 : index
    %138 = vector.load %arg13[%c0_50, %c0_51] : memref<1x1xf32, #tpu.memory_space<vmem>>, vector<1x1xf32>
    tpu.vector_store %arg13[%c0_50, %c0_51], %137 {strides = array<i32>} : memref<1x1xf32, #tpu.memory_space<vmem>>, vector<1x1xf32>,
    %c0_52 = arith.constant 0 : index
    %c0_53 = arith.constant 0 : index
    %139 = vector.load %arg14[%c0_52, %c0_53] : memref<1x256xf32, #tpu.memory_space<vmem>>, vector<1x256xf32>
    %140 = arith.addf %6, %7 : vector<8x256xf32>
    %cst_54 = arith.constant dense<0.000000e+00> : vector<256xf32>
    %141 = vector.multi_reduction <add>, %140, %cst_54 [0] : vector<8x256xf32> to vector<256xf32>
    %142 = vector.shape_cast %141 : vector<256xf32> to vector<1x256xf32>
    %143 = arith.addf %139, %142 : vector<1x256xf32>
    %c0_55 = arith.constant 0 : index
    %c0_56 = arith.constant 0 : index
    %144 = vector.load %arg14[%c0_55, %c0_56] : memref<1x256xf32, #tpu.memory_space<vmem>>, vector<1x256xf32>
    tpu.vector_store %arg14[%c0_55, %c0_56], %143 {strides = array<i32>} : memref<1x256xf32, #tpu.memory_space<vmem>>, vector<1x256xf32>,
    %c0_57 = arith.constant 0 : index
    %c0_58 = arith.constant 0 : index
    %145 = vector.load %arg15[%c0_57, %c0_58] : memref<1x256xf32, #tpu.memory_space<vmem>>, vector<1x256xf32>
    %cst_59 = arith.constant dense<0.000000e+00> : vector<256xf32>
    %146 = vector.multi_reduction <add>, %8, %cst_59 [0] : vector<8x256xf32> to vector<256xf32>
    %147 = vector.shape_cast %146 : vector<256xf32> to vector<1x256xf32>
    %148 = arith.addf %145, %147 : vector<1x256xf32>
    %c0_60 = arith.constant 0 : index
    %c0_61 = arith.constant 0 : index
    %149 = vector.load %arg15[%c0_60, %c0_61] : memref<1x256xf32, #tpu.memory_space<vmem>>, vector<1x256xf32>
    tpu.vector_store %arg15[%c0_60, %c0_61], %148 {strides = array<i32>} : memref<1x256xf32, #tpu.memory_space<vmem>>, vector<1x256xf32>,
    %c1_i32 = arith.constant 1 : i32
    %150 = arith.cmpi eq, %arg0, %c1_i32 : i32
    %151 = arith.extui %150 : i1 to i32
    %c0_i32_62 = arith.constant 0 : i32
    %152 = arith.cmpi ne, %151, %c0_i32_62 : i32
    scf.if %152 {
      %c0_63 = arith.constant 0 : index
      %c0_64 = arith.constant 0 : index
      %153 = vector.load %arg13[%c0_63, %c0_64] : memref<1x1xf32, #tpu.memory_space<vmem>>, vector<1x1xf32>
      %cst_65 = arith.constant 6.250000e-02 : f32
      %154 = vector.broadcast %cst_65 : f32 to vector<1x1xf32>
      %155 = arith.mulf %153, %154 : vector<1x1xf32>
      %c0_66 = arith.constant 0 : index
      %c0_67 = arith.constant 0 : index
      %156 = vector.load %arg10[%c0_66, %c0_67] : memref<1x1xf32, #tpu.memory_space<vmem>>, vector<1x1xf32>
      tpu.vector_store %arg10[%c0_66, %c0_67], %155 {strides = array<i32>} : memref<1x1xf32, #tpu.memory_space<vmem>>, vector<1x1xf32>,
      %c0_68 = arith.constant 0 : index
      %c0_69 = arith.constant 0 : index
      %157 = vector.load %arg14[%c0_68, %c0_69] : memref<1x256xf32, #tpu.memory_space<vmem>>, vector<1x256xf32>
      %cst_70 = arith.constant 3.125000e-02 : f32
      %158 = vector.broadcast %cst_70 : f32 to vector<1x256xf32>
      %159 = arith.mulf %157, %158 : vector<1x256xf32>
      %c0_71 = arith.constant 0 : index
      %c0_72 = arith.constant 0 : index
      %160 = vector.load %arg15[%c0_71, %c0_72] : memref<1x256xf32, #tpu.memory_space<vmem>>, vector<1x256xf32>
      %cst_73 = arith.constant 6.250000e-02 : f32
      %161 = vector.broadcast %cst_73 : f32 to vector<1x256xf32>
      %162 = arith.mulf %160, %161 : vector<1x256xf32>
      %cst_74 = arith.constant 0.899999976 : f32
      %163 = vector.broadcast %cst_74 : f32 to vector<1x256xf32>
      %164 = arith.mulf %4, %163 : vector<1x256xf32>
      %cst_75 = arith.constant 1.000000e-01 : f32
      %165 = vector.broadcast %cst_75 : f32 to vector<1x256xf32>
      %166 = arith.mulf %159, %165 : vector<1x256xf32>
      %167 = arith.addf %164, %166 : vector<1x256xf32>
      %c0_76 = arith.constant 0 : index
      %c0_77 = arith.constant 0 : index
      %168 = vector.load %arg11[%c0_76, %c0_77] : memref<1x256xf32, #tpu.memory_space<vmem>>, vector<1x256xf32>
      tpu.vector_store %arg11[%c0_76, %c0_77], %167 {strides = array<i32>} : memref<1x256xf32, #tpu.memory_space<vmem>>, vector<1x256xf32>,
      %cst_78 = arith.constant 0.899999976 : f32
      %169 = vector.broadcast %cst_78 : f32 to vector<1x256xf32>
      %170 = arith.mulf %5, %169 : vector<1x256xf32>
      %cst_79 = arith.constant 1.000000e-01 : f32
      %171 = vector.broadcast %cst_79 : f32 to vector<1x256xf32>
      %172 = arith.mulf %162, %171 : vector<1x256xf32>
      %173 = arith.addf %170, %172 : vector<1x256xf32>
      %c0_80 = arith.constant 0 : index
      %c0_81 = arith.constant 0 : index
      %174 = vector.load %arg12[%c0_80, %c0_81] : memref<1x256xf32, #tpu.memory_space<vmem>>, vector<1x256xf32>
      tpu.vector_store %arg12[%c0_80, %c0_81], %173 {strides = array<i32>} : memref<1x256xf32, #tpu.memory_space<vmem>>, vector<1x256xf32>,
    } else {
    }
    return
  }
  func.func @transform_0(%arg0: i32) -> i32 {
    %c0_i32 = arith.constant 0 : i32
    %c0_i32_0 = arith.constant 0 : i32
    return %c0_i32 : i32
  }
  func.func @transform_1(%arg0: i32) -> (i32, i32) {
    %c0_i32 = arith.constant 0 : i32
    %c0_i32_0 = arith.constant 0 : i32
    return %arg0, %c0_i32 : i32, i32
  }
  func.func @transform_2(%arg0: i32) -> (i32, i32) {
    %c0_i32 = arith.constant 0 : i32
    %c0_i32_0 = arith.constant 0 : i32
    return %arg0, %c0_i32 : i32, i32
  }
  func.func @transform_3(%arg0: i32) -> (i32, i32) {
    %c0_i32 = arith.constant 0 : i32
    %c0_i32_0 = arith.constant 0 : i32
    return %arg0, %c0_i32 : i32, i32
  }
  func.func @transform_4(%arg0: i32) -> (i32, i32) {
    %c0_i32 = arith.constant 0 : i32
    %c0_i32_0 = arith.constant 0 : i32
    return %arg0, %c0_i32 : i32, i32
  }
  func.func @transform_5(%arg0: i32) -> (i32, i32) {
    %c0_i32 = arith.constant 0 : i32
    %c0_i32_0 = arith.constant 0 : i32
    return %arg0, %c0_i32 : i32, i32
  }
  func.func @transform_6(%arg0: i32) -> (i32, i32) {
    %c0_i32 = arith.constant 0 : i32
    %c0_i32_0 = arith.constant 0 : i32
    return %arg0, %c0_i32 : i32, i32
  }
  func.func @transform_7(%arg0: i32) -> (i32, i32) {
    %c0_i32 = arith.constant 0 : i32
    %c0_i32_0 = arith.constant 0 : i32
    %c0_i32_1 = arith.constant 0 : i32
    return %c0_i32, %c0_i32_0 : i32, i32
  }
  func.func @transform_8(%arg0: i32) -> (i32, i32) {
    %c0_i32 = arith.constant 0 : i32
    %c0_i32_0 = arith.constant 0 : i32
    %c0_i32_1 = arith.constant 0 : i32
    return %c0_i32, %c0_i32_0 : i32, i32
  }
  func.func @transform_9(%arg0: i32) -> (i32, i32) {
    %c0_i32 = arith.constant 0 : i32
    %c0_i32_0 = arith.constant 0 : i32
    %c0_i32_1 = arith.constant 0 : i32
    return %c0_i32, %c0_i32_0 : i32, i32
  }
  func.func @transform_10(%arg0: i32) -> (i32, i32) {
    %c0_i32 = arith.constant 0 : i32
    %c0_i32_0 = arith.constant 0 : i32
    %c0_i32_1 = arith.constant 0 : i32
    return %c0_i32, %c0_i32_0 : i32, i32
  }
  func.func @transform_11(%arg0: i32) -> (i32, i32) {
    %c0_i32 = arith.constant 0 : i32
    %c0_i32_0 = arith.constant 0 : i32
    %c0_i32_1 = arith.constant 0 : i32
    return %c0_i32, %c0_i32_0 : i32, i32
  }
}

</mosaic_0001>

<bundles_post_ra>
// kernel: fn.1
= control target key start
LH: loop header
LB: loop body
LE: loop exit
PB: predicated region body
PF: predicated region fallthrough
CT: control target
= control target key end

     0   :  { %s2109_s0 = inlined_call_operand.<no memory space> [shape: f32[1], index: 0, kind: input, shape index: {}]   ;;  %s2110_s1 = inlined_call_operand.hbm [shape: f32[16,256], index: 1, kind: input, shape index: {}]   ;;  %s2111_s2 = inlined_call_operand.hbm [shape: f32[16,256], index: 2, kind: input, shape index: {}]   ;;  %s2112_s3 = inlined_call_operand.hbm [shape: f32[16,256], index: 3, kind: input, shape index: {}]   ;;  %s2113_s4 = inlined_call_operand.hbm [shape: f32[16,256], index: 4, kind: input, shape index: {}]   ;;  %s2114_s5 = inlined_call_operand.hbm [shape: f32[16,256], index: 5, kind: input, shape index: {}]   ;;  %s2115_s6 = inlined_call_operand.hbm [shape: f32[16,256], index: 6, kind: input, shape index: {}]   ;;  %s2116_s7 = inlined_call_operand.vmem [shape: f32[1,256], index: 7, kind: input, shape index: {}]   ;;  %s2117_s8 = inlined_call_operand.vmem [shape: f32[1,256], index: 8, kind: input, shape index: {}]   ;;  %s2118_s9 = inlined_call_operand.hbm [shape: f32[1,1], index: 9, kind: output, shape index: {0}]   ;;  %s2119_s10 = inlined_call_operand.hbm [shape: f32[1,256], index: 10, kind: output, shape index: {1}]   ;;  %s2120_s11 = inlined_call_operand.hbm [shape: f32[1,256], index: 11, kind: output, shape index: {2}]  }
   0x1   :  { %2129 = sst [smem:[#allocation30_spill]] %s2111_s2 }
   0x2   :  { %2130 = sst [smem:[#allocation31_spill]] %s2113_s4 }
   0x3   :  { %2131 = sst [smem:[#allocation32_spill]] %s2120_s11 }
   0x4   :  { %17 = sst [smem:[#allocation5]] %s2109_s0 }
   0x5   :  { %18 = vsyncpa [#allocation7], 0 }
   0x6   :  { %20 = vsyncpa [#allocation7 + $0x1], 0 }
   0x7   :  { %21 = vsyncpa [#allocation10], 0 }
   0x8   :  { %23 = vsyncpa [#allocation10 + $0x1], 0 }
   0x9   :  { %24 = vsyncpa [#allocation13], 0 }
   0xa   :  { %26 = vsyncpa [#allocation13 + $0x1], 0 }
   0xb   :  { %27 = vsyncpa [#allocation16], 0 }
   0xc   :  { %29 = vsyncpa [#allocation16 + $0x1], 0 }
   0xd   :  { %30 = vsyncpa [#allocation8], 0 }
   0xe   :  { %31 = vsyncpa [#allocation19], 0  ;;  %s1671_s19 = smov 0   ;;  %s1673_s20 = smov 0  }
   0xf   :  { %s1675_s21 = smov 0   ;;  %s1677_s22 = smov 0  }
  0x10 LB: > { %2132 = sst [smem:[#allocation27_spill]] %s1591_s21  ;;  %s1690_s0 = sadd.s32 4294967295, %s1595_s22   ;;  %s1595_s22 = sphi %s1677_s22, %s2155_s22   ;;  %s1591_s21 = sphi %s1675_s21, %s2157_s21   ;;  %s1587_s20 = sphi %s1673_s20, %s2159_s20   ;;  %s1583_s19 = sphi %s1671_s19, %s2158_s19  }
  0x11   : > { %s1693_s23 = sadd.s32 1, %s1595_s22   ;;  %s65_s25 = sadd.s32 1, %s1591_s21 }
  0x12   : > { %2133 = sst [smem:[#allocation28_spill]] %s1693_s23  ;;  %s62_s24 = ssub.s32 %s1595_s22, %s1693_s23 }
  0x13   : > { %p63_p0 = scmp.eq.s32.totalorder %s62_s24, 0  ;;  %p72_p1 = scmp.ne.s32.totalorder %s1591_s21, %s1587_s20 }
  0x14   : > { %p73_p2 = scmp.eq.s32.totalorder %s1595_s22, 0  ;;  %p78_p3 = scmp.ne.s32.totalorder %s1587_s20, %s1583_s19 }
  0x15   : > { %s1703_s26 = scalar_select %p63_p0, %s1591_s21, %s65_s25  }
  0x16   : > { %p74_p4 = por %p73_p2, %p72_p1  ;;  %p79_p5 = scmp.eq.s32.totalorder %s1690_s0, 0 }
  0x17   : > { %2134 = sst [smem:[#allocation29_spill]] %s1703_s26  ;;  %p1197_p6 = scmp.lt.s32.totalorder %s1595_s22, 2 }
  0x18   : > { %p1707_p7 = por %p79_p5, %p78_p3  ;;  %s1712_s28 = sand.u32 1, %s1591_s21  }
  0x19   : > { %s1715_s29 = sshll.u32 %s1712_s28, 4  ;;  %s1718_s30 = sshll.u32 %s1595_s22, 8 }
  0x1a   : > { %s2135_s27 = scalar_select %p1707_p7, 1, 0 }
  0x1b   : > { %p1720_p8 = pnand %p1197_p6, %p74_p4  ;;  %s2122_s13 = sand.u32 1, %s1595_s22  }
  0x1c   : > { %s2137_s2 = sld [smem:[#allocation30_spill]]  ;;  %s369_s17 = scalar_lea.vmem [#allocation9], %s1715_s29 }
  0x1d   : > { %s2136_s12 = scalar_select %p1720_p8, 1, 0 }
  0x1e   : > { %s377_s18 = sshll.u32 %s369_s17, 4  ;;  %s1738_s19 = scalar_lea.sflag [#allocation10], %s2122_s13  ;;  %s1733_s18 = int_to_ptr.vmem [resolvable:$true] %s377_s18 }
  0x1f   : > { %p1744_p12 = pneg %p1720_p8 }
  0x22   : > { %s1729_s16 = scalar_lea.hbm %s2137_s2, %s1718_s30  ;;  %s1288_s17 = scalar_lea.hbm %s2137_s2, 512 }
  0x23   : > { %s1283_s24 = scalar_lea.hbm %s1729_s16, 256  ;;  %p1289_p1 = scmp.lt.u32.totalorder %s1729_s16, %s2137_s2 }
  0x24   : > { %p1284_p11 = scmp.ne.s32.totalorder %s1729_s16, %s1283_s24  ;;  %p1290_p2 = scmp.lt.u32.totalorder %s1288_s17, %s1283_s24 }
  0x25   : > { %p1292_p4 = scmp.lt.u32.totalorder %s1283_s24, %s1729_s16 }
  0x26   : > { %p1286_p13 = pnand %p1744_p12, %p1284_p11  ;;  %p1291_p3 = por %p1290_p2, %p1289_p1 }
  0x28   : > { %p1287_p0 = pneg %p1286_p13  ;;  %p1293_p5 = por %p1292_p4, %p1291_p3 }
  0x2a   : > { %p1294_p6 = pnand %p1293_p5, %p1287_p0 }
  0x2c   : > { %1297 = shalt.err (!%p1294_p6)
}
  0x2d   : > { %s1298_s13 = scalar_lea.vmem %s1733_s18, 256  ;;  %s1597_s14 = smov [#allocation9]  }
  0x2e   : > { %p1299_p11 = scmp.ne.s32.totalorder %s1733_s18, %s1298_s13  ;;  %s1303_s15 = sshll.u32 %s1597_s14, 4  ;;  %s1304_s15 = int_to_ptr.vmem [resolvable:$false] %s1303_s15 }
  0x2f   : > { %s1305_s21 = scalar_lea.vmem %s1304_s15, 512  ;;  %p1306_p10 = scmp.lt.s32.totalorder %s1733_s18, %s1304_s15 }
  0x30   : > { %p1301_p13 = pnand %p1299_p11, %p1744_p12  ;;  %p1307_p7 = scmp.lt.s32.totalorder %s1305_s21, %s1298_s13 }
  0x32   : > { %p1302_p9 = pneg %p1301_p13  ;;  %p1308_p1 = por %p1307_p7, %p1306_p10 }
  0x34   : > { %p1309_p2 = pnand %p1308_p1, %p1302_p9 }
  0x36   : > { %1312 = shalt.err (!%p1309_p2)
}
  0x37   : > { %1184 = dma.hbm_to_vmem [thread:$0]  (!%p1720_p8), %s1729_s16, 256, %s1733_s18, %s1738_s19  }
  0x38   : > { %p2139_p0 = scmp.lt.s32.totalorder %s1595_s22, 3  ;;  %p2140_p3 = scmp.ge.s32.totalorder %s1595_s22, 1 }
  0x39   : > { %s2142_s4 = sld [smem:[#allocation31_spill]]  ;;  %s407_s14 = scalar_lea.vmem [#allocation12], %s1715_s29 }
  0x3a   : > { %p1772_p4 = pnand %p2140_p3, %p2139_p0  ;;  %s415_s15 = sshll.u32 %s407_s14, 4  ;;  %s416_s15 = int_to_ptr.vmem [resolvable:$true] %s415_s15 }
  0x3b   : > { %s2143_s21 = sand.u32 1, %s1595_s22  }
  0x3c   : > { %s2141_s26 = scalar_select %p1772_p4, 1, 0 }
  0x3d   : > { %s1785_s16 = scalar_lea.sflag [#allocation13], %s2143_s21 }
  0x3f   : > { %s1780_s17 = scalar_lea.hbm %s2142_s4, %s1718_s30  ;;  %s1318_s13 = scalar_lea.hbm %s2142_s4, 512 }
  0x40   : > { %s1313_s18 = scalar_lea.hbm %s1780_s17, 256  ;;  %p1319_p5 = scmp.lt.u32.totalorder %s1780_s17, %s2142_s4 }
  0x41   : > { %p1314_p7 = scmp.ne.s32.totalorder %s1780_s17, %s1313_s18  ;;  %p1320_p6 = scmp.lt.u32.totalorder %s1318_s13, %s1313_s18 }
  0x42   : > { %p1322_p13 = scmp.lt.u32.totalorder %s1313_s18, %s1780_s17 }
  0x43   : > { %p1316_p9 = pnand %p1314_p7, %p1744_p12  ;;  %p1321_p11 = por %p1320_p6, %p1319_p5 }
  0x45   : > { %p1317_p10 = pneg %p1316_p9  ;;  %p1323_p1 = por %p1322_p13, %p1321_p11 }
  0x47   : > { %p1324_p2 = pnand %p1323_p1, %p1317_p10 }
  0x49   : > { %1327 = shalt.err (!%p1324_p2)
}
  0x4a   : > { %s1328_s22 = scalar_lea.vmem %s416_s15, 256  ;;  %s1598_s14 = smov [#allocation12]  }
  0x4b   : > { %p1329_p0 = scmp.ne.s32.totalorder %s416_s15, %s1328_s22  ;;  %s1333_s21 = sshll.u32 %s1598_s14, 4  ;;  %s1334_s21 = int_to_ptr.vmem [resolvable:$false] %s1333_s21 }
  0x4c   : > { %s1335_s2 = scalar_lea.vmem %s1334_s21, 512  ;;  %p1336_p9 = scmp.lt.s32.totalorder %s416_s15, %s1334_s21 }
  0x4d   : > { %p1331_p3 = pnand %p1329_p0, %p1744_p12  ;;  %p1337_p4 = scmp.lt.s32.totalorder %s1335_s2, %s1328_s22 }
  0x4f   : > { %p1332_p7 = pneg %p1331_p3  ;;  %p1338_p8 = por %p1337_p4, %p1336_p9 }
  0x51   : > { %p1339_p5 = pnand %p1338_p8, %p1332_p7 }
  0x53   : > { %1342 = shalt.err (!%p1339_p5)
}
  0x54   : > { %p2144_p6 = scmp.ne.s32.totalorder %s2136_s12, 0  ;;  %s1809_s18 = scalar_lea.hbm %s2110_s1, %s1718_s30 }
  0x55   : > { %s350_s13 = scalar_lea.vmem [#allocation6], %s1715_s29  ;;  %s347_s22 = scalar_lea.sflag [#allocation7], %s1712_s28 }
  0x56   : > { %1190 = dma.hbm_to_vmem [thread:$0]  (!%p2144_p6), %s1780_s17, 256, %s416_s15, %s1785_s16  }
  0x57   : > { %s358_s24 = sshll.u32 %s350_s13, 4  ;;  %s1343_s14 = scalar_lea.hbm %s1809_s18, 256  ;;  %s359_s24 = int_to_ptr.vmem [resolvable:$true] %s358_s24 }
  0x58   : > { %p1344_p8 = scmp.ne.s32.totalorder %s1809_s18, %s1343_s14  ;;  %s1348_s15 = scalar_lea.hbm %s2110_s1, 512 }
  0x59   : > { %p1349_p11 = scmp.lt.u32.totalorder %s1809_s18, %s2110_s1  ;;  %p1350_p13 = scmp.lt.u32.totalorder %s1348_s15, %s1343_s14 }
  0x5a   : > { %p1346_p4 = pnand %p1344_p8, %p1744_p12  ;;  %p1352_p2 = scmp.lt.u32.totalorder %s1343_s14, %s1809_s18 }
  0x5b   : > { %p1351_p1 = por %p1350_p13, %p1349_p11 }
  0x5c   : > { %p1347_p10 = pneg %p1346_p4 }
  0x5d   : > { %p1353_p0 = por %p1352_p2, %p1351_p1 }
  0x5f   : > { %p1354_p3 = pnand %p1353_p0, %p1347_p10 }
  0x61   : > { %1357 = shalt.err (!%p1354_p3)
}
  0x62   : > { %s1358_s23 = scalar_lea.vmem %s359_s24, 256  ;;  %s1599_s13 = smov [#allocation6]  }
  0x63   : > { %p1359_p7 = scmp.ne.s32.totalorder %s359_s24, %s1358_s23  ;;  %s1363_s4 = sshll.u32 %s1599_s13, 4  ;;  %s1364_s4 = int_to_ptr.vmem [resolvable:$false] %s1363_s4 }
  0x64   : > { %s1365_s21 = scalar_lea.vmem %s1364_s4, 512  ;;  %p1366_p8 = scmp.lt.s32.totalorder %s359_s24, %s1364_s4 }
  0x65   : > { %p1361_p9 = pnand %p1359_p7, %p1744_p12  ;;  %p1367_p4 = scmp.lt.s32.totalorder %s1365_s21, %s1358_s23 }
  0x67   : > { %p1362_p5 = pneg %p1361_p9  ;;  %p1368_p6 = por %p1367_p4, %p1366_p8 }
  0x69   : > { %p1369_p11 = pnand %p1368_p6, %p1362_p5 }
  0x6b   : > { %1372 = shalt.err (!%p1369_p11)
}
  0x6c   : > { %p2145_p13 = scmp.ne.s32.totalorder %s2136_s12, 0  ;;  %s1834_s15 = scalar_lea.hbm %s2112_s3, %s1718_s30 }
  0x6d   : > { %s388_s4 = scalar_lea.vmem [#allocation11], %s1715_s29  ;;  %s1373_s11 = scalar_lea.hbm %s1834_s15, 256 }
  0x6e   : > { %1181 = dma.hbm_to_vmem [thread:$0]  (!%p2145_p13), %s1809_s18, 256, %s359_s24, %s347_s22  }
  0x6f   : > { %s396_s2 = sshll.u32 %s388_s4, 4  ;;  %p1374_p6 = scmp.ne.s32.totalorder %s1834_s15, %s1373_s11  ;;  %s397_s2 = int_to_ptr.vmem [resolvable:$true] %s396_s2 }
  0x70   : > { %s1378_s18 = scalar_lea.hbm %s2112_s3, 512  ;;  %p1379_p2 = scmp.lt.u32.totalorder %s1834_s15, %s2112_s3 }
  0x71   : > { %p1376_p10 = pnand %p1374_p6, %p1744_p12  ;;  %p1380_p0 = scmp.lt.u32.totalorder %s1378_s18, %s1373_s11 }
  0x72   : > { %p1382_p7 = scmp.lt.u32.totalorder %s1373_s11, %s1834_s15 }
  0x73   : > { %p1377_p1 = pneg %p1376_p10  ;;  %p1381_p3 = por %p1380_p0, %p1379_p2 }
  0x75   : > { %p1383_p9 = por %p1382_p7, %p1381_p3 }
  0x77   : > { %p1384_p5 = pnand %p1383_p9, %p1377_p1 }
  0x79   : > { %1387 = shalt.err (!%p1384_p5)
}
  0x7a   : > { %s1388_s21 = scalar_lea.vmem %s397_s2, 256  ;;  %s1600_s14 = smov [#allocation11]  }
  0x7b   : > { %p1389_p8 = scmp.ne.s32.totalorder %s397_s2, %s1388_s21  ;;  %s1393_s17 = sshll.u32 %s1600_s14, 4  ;;  %s1394_s17 = int_to_ptr.vmem [resolvable:$false] %s1393_s17 }
  0x7c   : > { %s1395_s4 = scalar_lea.vmem %s1394_s17, 512  ;;  %p1396_p6 = scmp.lt.s32.totalorder %s397_s2, %s1394_s17 }
  0x7d   : > { %p1391_p4 = pnand %p1389_p8, %p1744_p12  ;;  %p1397_p10 = scmp.lt.s32.totalorder %s1395_s4, %s1388_s21 }
  0x7f   : > { %p1392_p11 = pneg %p1391_p4  ;;  %p1398_p13 = por %p1397_p10, %p1396_p6 }
  0x81   : > { %p1399_p0 = pnand %p1398_p13, %p1392_p11 }
  0x83   : > { %1402 = shalt.err (!%p1399_p0)
}
  0x84   : > { %p2146_p2 = scmp.ne.s32.totalorder %s2136_s12, 0  ;;  %s1859_s13 = scalar_lea.hbm %s2114_s5, %s1718_s30 }
  0x85   : > { %s426_s18 = scalar_lea.vmem [#allocation14], %s1715_s29  ;;  %s1403_s22 = scalar_lea.hbm %s1859_s13, 256 }
  0x86   : > { %1187 = dma.hbm_to_vmem [thread:$0]  (!%p2146_p2), %s1834_s15, 256, %s397_s2, %s1738_s19  }
  0x87   : > { %s434_s24 = sshll.u32 %s426_s18, 4  ;;  %p1404_p13 = scmp.ne.s32.totalorder %s1859_s13, %s1403_s22  ;;  %s435_s24 = int_to_ptr.vmem [resolvable:$true] %s434_s24 }
  0x88   : > { %s1408_s19 = scalar_lea.hbm %s2114_s5, 512  ;;  %p1409_p7 = scmp.lt.u32.totalorder %s1859_s13, %s2114_s5 }
  0x89   : > { %p1406_p1 = pnand %p1404_p13, %p1744_p12  ;;  %p1410_p9 = scmp.lt.u32.totalorder %s1408_s19, %s1403_s22 }
  0x8a   : > { %p1412_p8 = scmp.lt.u32.totalorder %s1403_s22, %s1859_s13 }
  0x8b   : > { %p1407_p3 = pneg %p1406_p1  ;;  %p1411_p5 = por %p1410_p9, %p1409_p7 }
  0x8d   : > { %p1413_p4 = por %p1412_p8, %p1411_p5 }
  0x8f   : > { %p1414_p11 = pnand %p1413_p4, %p1407_p3 }
  0x91   : > { %1417 = shalt.err (!%p1414_p11)
}
  0x92   : > { %s1418_s17 = scalar_lea.vmem %s435_s24, 256  ;;  %s1601_s4 = smov [#allocation14]  }
  0x93   : > { %p1419_p6 = scmp.ne.s32.totalorder %s435_s24, %s1418_s17  ;;  %s1423_s11 = sshll.u32 %s1601_s4, 4  ;;  %s1424_s11 = int_to_ptr.vmem [resolvable:$false] %s1423_s11 }
  0x94   : > { %s1425_s23 = scalar_lea.vmem %s1424_s11, 512  ;;  %p1426_p13 = scmp.lt.s32.totalorder %s435_s24, %s1424_s11 }
  0x95   : > { %p1421_p10 = pnand %p1419_p6, %p1744_p12  ;;  %p1427_p1 = scmp.lt.s32.totalorder %s1425_s23, %s1418_s17 }
  0x97   : > { %p1422_p0 = pneg %p1421_p10  ;;  %p1428_p2 = por %p1427_p1, %p1426_p13 }
  0x99   : > { %p1429_p7 = pnand %p1428_p2, %p1422_p0 }
  0x9b   : > { %1432 = shalt.err (!%p1429_p7)
}
  0x9c   : > { %p2147_p9 = scmp.ne.s32.totalorder %s2136_s12, 0  ;;  %s1884_s21 = scalar_lea.hbm %s2115_s6, %s1718_s30 }
  0x9d   : > { %s445_s14 = scalar_lea.vmem [#allocation15], %s1715_s29  ;;  %s442_s15 = scalar_lea.sflag [#allocation16], %s1712_s28 }
  0x9e   : > { %1193 = dma.hbm_to_vmem [thread:$0]  (!%p2147_p9), %s1859_s13, 256, %s435_s24, %s1785_s16  }
  0x9f   : > { %s453_s19 = sshll.u32 %s445_s14, 4  ;;  %s1433_s2 = scalar_lea.hbm %s1884_s21, 256  ;;  %s454_s19 = int_to_ptr.vmem [resolvable:$true] %s453_s19 }
  0xa0   : > { %p1434_p2 = scmp.ne.s32.totalorder %s1884_s21, %s1433_s2  ;;  %s1438_s13 = scalar_lea.hbm %s2115_s6, 512 }
  0xa1   : > { %p1439_p8 = scmp.lt.u32.totalorder %s1884_s21, %s2115_s6  ;;  %p1440_p4 = scmp.lt.u32.totalorder %s1438_s13, %s1433_s2 }
  0xa2   : > { %p1436_p3 = pnand %p1434_p2, %p1744_p12  ;;  %p1442_p6 = scmp.lt.u32.totalorder %s1433_s2, %s1884_s21 }
  0xa3   : > { %p1441_p11 = por %p1440_p4, %p1439_p8 }
  0xa4   : > { %p1437_p5 = pneg %p1436_p3 }
  0xa5   : > { %p1443_p10 = por %p1442_p6, %p1441_p11 }
  0xa7   : > { %p1444_p0 = pnand %p1443_p10, %p1437_p5 }
  0xa9   : > { %1447 = shalt.err (!%p1444_p0)
}
  0xaa   : > { %s1448_s28 = scalar_lea.vmem %s454_s19, 256  ;;  %s1602_s29 = smov [#allocation15]  }
  0xab   : > { %p1449_p13 = scmp.ne.s32.totalorder %s454_s19, %s1448_s28  ;;  %s1453_s4 = sshll.u32 %s1602_s29, 4  ;;  %s1454_s4 = int_to_ptr.vmem [resolvable:$false] %s1453_s4 }
  0xac   : > { %s1455_s11 = scalar_lea.vmem %s1454_s4, 512  ;;  %p1456_p2 = scmp.lt.s32.totalorder %s454_s19, %s1454_s4 }
  0xad   : > { %p1451_p1 = pnand %p1449_p13, %p1744_p12  ;;  %p1457_p3 = scmp.lt.s32.totalorder %s1455_s11, %s1448_s28 }
  0xaf   : > { %p1452_p7 = pneg %p1451_p1  ;;  %p1458_p9 = por %p1457_p3, %p1456_p2 }
  0xb1   : > { %p1459_p4 = pnand %p1458_p9, %p1452_p7 }
  0xb3   : > { %1462 = shalt.err (!%p1459_p4)
}
  0xb4   : > { %p2148_p8 = scmp.ne.s32.totalorder %s2136_s12, 0  ;;  %p2149_p5 = scmp.ne.s32.totalorder %s2141_s26, 0 }
  0xb5   : > { %s464_s25 = sand.u32 (!%p2149_p5), 1, %s1587_s20   ;;  %p2150_p12 = scmp.ne.s32.totalorder (!%p2149_p5), %s2135_s27, 0 }
  0xb6   : > { %1196 = dma.hbm_to_vmem [thread:$0]  (!%p2148_p8), %s1884_s21, 256, %s454_s19, %s442_s15  }
  0xb7   : > { %462 = sbr.rel (%p2149_p5) target bundleno = 995 (0x3e3), region = 56  ;;  %s1908_s23 = sshll.u32 (!%p2149_p5), %s464_s25, 4 }
  0xb8   : > { %s465_s18 = scalar_lea.sflag (!%p2149_p5), [#allocation7], %s464_s25  ;;  %s468_s22 = scalar_lea.vmem (!%p2149_p5), [#allocation6], %s1908_s23 }
  0xbe   : > { %1558 = dma.done.wait (%p2150_p12), %s465_s18, 256  }
  0xbf   : > { %1560 = vsyncadd (%p2150_p12), %s465_s18, 4294967040  ;;  %s473_s12 = sand.u32 1, %s1690_s0   ;;  %s477_s26 = scalar_lea.vmem [#allocation9], %s1908_s23 }
  0xc0   : > { %s474_s21 = scalar_lea.sflag [#allocation10], %s473_s12 }
  0xc1   : > { %1562 = dma.done.wait (%p2150_p12), %s474_s21, 512  }
  0xc2   : > { %1564 = vsyncadd (%p2150_p12), %s474_s21, 4294966784  ;;  %s486_s14 = scalar_lea.vmem [#allocation11], %s1908_s23  ;;  %s492_s19 = scalar_lea.sflag [#allocation13], %s473_s12 }
  0xc3   : > { %s495_s15 = scalar_lea.vmem [#allocation12], %s1908_s23 }
  0xc4   : > { %1566 = dma.done.wait (%p2150_p12), %s492_s19, 512  }
  0xc5   : > { %1568 = vsyncadd (%p2150_p12), %s492_s19, 4294966784  ;;  %s504_s2 = scalar_lea.vmem [#allocation14], %s1908_s23  ;;  %s510_s17 = scalar_lea.sflag [#allocation16], %s464_s25 }
  0xc6   : > { %s513_s16 = scalar_lea.vmem [#allocation15], %s1908_s23 }
  0xc7   : > { %1570 = dma.done.wait (%p2150_p12), %s510_s17, 256  }
  0xc8   : > { %1572 = vsyncadd (%p2150_p12), %s510_s17, 4294967040  ;;  %p1136_p9 = scmp.ne.s32.totalorder %s1690_s0, 0 }
  0xc9   : > { %vm576_vm0 = vcmask (!%p1136_p9), 0   ;;  %v578_v0 = vlaneseq (!%p1136_p9)  ;;  %v1603_v1 = vmov (!%p1136_p9), 0.0  }
  0xca   : > { %575 = sbr.rel (%p1136_p9) target bundleno = 209 (0xd1), region = 84  ;;  %577 = vst.msk [vmem:[#allocation2] sm:$0x1] (!%p1136_p9), %vm576_vm0, %v1603_v1 }
  0xcb   : > { %vm580_vm1 = vcmp.lt.s32.totalorder (!%p1136_p9), %v578_v0, 256 }
  0xcc   : > { %582 = vst.msk [vmem:[#allocation3] sm:$0x3] (!%p1136_p9), %vm580_vm1, %v1603_v1  ;;  %583 = vst.msk [vmem:[#allocation4] sm:$0x3] (!%p1136_p9), %vm580_vm1, %v1603_v1 }
  0xd1 PF: > { %s584_s13 = sld [smem:[#allocation5]]  ;;  %v587_v2 = vld [vmem:[%s495_s15] sm:$0xff]  ;;  %v594_v3 = vlaneseq  ;;  %v588_v4 = vld [vmem:[%s495_s15 + $0x8] sm:$0xff]  ;;  %v1604_v10 = vmov 1966171168   ;;  %vm793_vm7 = vcmask 7168  }
  0xd2   : > { %v589_v5 = vld [vmem:[%s504_s2] sm:$0xff]  ;;  %v590_v6 = vld [vmem:[%s504_s2 + $0x8] sm:$0xff]  ;;  %v827_v11 = vunpack.c.l.s4 %v1604_v10  ;;  %vm806_vm8 = vcmask 0   ;;  %p1137_p11 = scmp.ne.s32.totalorder %s1690_s0, 1 }
  0xd3   : > { %v595_v7 = vshrl.u32 %v594_v3, 7  ;;  %v809_v8 = vadd.f32 %v589_v5, %v587_v2  ;;  %v810_v9 = vadd.f32 %v590_v6, %v588_v4  ;;  %v591_v12 = vld [vmem:[%s513_s16] sm:$0xff]  ;;  %v592_v13 = vld [vmem:[%s513_s16 + $0x8] sm:$0xff]  ;;  %vm1968_vm2 = vcmp.lt.s32.totalorder %v594_v3, 256 }
  0xd4   : > { %v1938_v14 = vld [vmem:[%s2116_s7] sm:$0x3]  ;;  %v848_v15 = vrot.slane %v591_v12, 4  ;;  %v854_v16 = vrot.slane %v592_v13, 4  ;;  %v828_v27 = vunpack.c.0.s8 %v827_v11 }
  0xd5   : > { %v596_v17 = vsub.s32 0, %v595_v7  ;;  %v600_v18 = vsub.s32 1, %v595_v7  ;;  %v811_v19 = vrot.slane %v809_v8, 4  ;;  %v817_v20 = vrot.slane %v810_v9, 4  ;;  %v1943_v21 = vld [vmem:[%s2117_s8] sm:$0x3] }
  0xd6   : > { %v849_v22 = vadd.f32 %v848_v15, %v591_v12  ;;  %v855_v23 = vadd.f32 %v854_v16, %v592_v13  ;;  %v831_v60 = vsub.s32 %v828_v27, %v595_v7 }
  0xd7   : > { %v597_v24 = vrot.slane %v1938_v14, %v596_v17  ;;  %v601_v25 = vrot.slane %v1938_v14, %v600_v18  ;;  %v812_v26 = vadd.f32 %v811_v19, %v809_v8  ;;  %v621_v28 = vstv %s584_s13 }
  0xd8   : > { %v818_v29 = vadd.f32 %v817_v20, %v810_v9  ;;  %v612_v30 = vrot.slane %v1943_v21, %v596_v17  ;;  %v616_v31 = vrot.slane %v1943_v21, %v600_v18  ;;  %v850_v35 = vrot.slane %v849_v22, 2  ;;  %v676_v17 = vld [vmem:[%s468_s22] sm:$0xff]  ;;  %v677_v18 = vld [vmem:[%s468_s22 + $0x8] sm:$0xff] }
  0xd9   : > { %v1949_v32 = vsub.f32 %v587_v2, %v597_v24  ;;  %v1951_v33 = vsub.f32 %v588_v4, %v601_v25  ;;  %v813_v34 = vrot.slane %v812_v26, 2  ;;  %v856_v39 = vrot.slane %v855_v23, 2 }
  0xda   : > { %v819_v36 = vrot.slane %v818_v29, 2  ;;  %v619_v37 = vsub.f32 %v591_v12, %v612_v30  ;;  %v620_v38 = vsub.f32 %v592_v13, %v616_v31  ;;  %v851_v43 = vadd.f32 %v850_v35, %v849_v22  ;;  %v700_v12 = vld [vmem:[%s477_s26] sm:$0xff]  ;;  %v701_v13 = vld [vmem:[%s477_s26 + $0x8] sm:$0xff] }
  0xdb   : > { %v1954_v40 = vmul.f32 %v621_v28, %v1949_v32  ;;  %v1957_v41 = vmul.f32 %v621_v28, %v1951_v33  ;;  %v814_v42 = vadd.f32 %v813_v34, %v812_v26  ;;  %v857_v47 = vadd.f32 %v856_v39, %v855_v23  ;;  %v726_v23 = vld [vmem:[%s486_s14] sm:$0xff] }
  0xdc   : > { %v820_v44 = vadd.f32 %v819_v36, %v818_v29  ;;  %v658_v45 = vmul.f32 %v621_v28, %v619_v37  ;;  %v659_v46 = vmul.f32 %v621_v28, %v620_v38  ;;  %v852_v50 = vrot.slane %v851_v43, 1 }
  0xdd   : > { %v624_v48 = vmax.f32 %v1954_v40, %v1957_v41  ;;  %v815_v49 = vrot.slane %v814_v42, 1  ;;  %v1961_v51 = vsub.f32 %v589_v5, %v597_v24  ;;  %v858_v54 = vrot.slane %v857_v47, 1  ;;  %v808_v5 = vld [vmem:[#allocation3] sm:$0x3] }
  0xde   : > { %v821_v52 = vrot.slane %v820_v44, 1  ;;  %v660_v53 = vmax.f32 %v658_v45, %v659_v46  ;;  %v1963_v55 = vsub.f32 %v590_v6, %v601_v25  ;;  %v853_v57 = vadd.f32 %v852_v50, %v851_v43  ;;  %v847_v6 = vld [vmem:[#allocation4] sm:$0x3] }
  0xdf   : > { %v816_v56 = vadd.f32 %v815_v49, %v814_v42  ;;  %625 = vmax.xlane.f32.xlu0 %v624_v48  ;;  %v640_v58 = vmul.f32 %v621_v28, %v1961_v51  ;;  %v859_v61 = vadd.f32 %v858_v54, %v857_v47  ;;  %v702_v15 = vmul.f32 10.0, %v700_v12  ;;  %v727_v24 = vld [vmem:[%s486_s14 + $0x8] sm:$0xff] }
  0xe0   : > { %v822_v59 = vadd.f32 %v821_v52, %v820_v44  ;;  %661 = vmax.xlane.f32.xlu1 %v660_v53  ;;  %v641_v62 = vmul.f32 %v621_v28, %v1963_v55  ;;  %v703_v16 = vmul.f32 10.0, %v701_v13  ;;  %v678_v19 = vmul.f32 10.0, %v676_v17 }
  0xe1   : > { %v862_v0 = vcombine.low %v853_v57, %v859_v61  ;;  %v679_v20 = vmul.f32 10.0, %v677_v18  ;;  %v728_v25 = vmul.f32 10.0, %v726_v23  ;;  %v729_v26 = vmul.f32 10.0, %v727_v24 }
  0xe2   : > { %v825_v63 = vcombine.low %v816_v56, %v822_v59  ;;  %v642_v1 = vmax.f32 %v640_v58, %v641_v62  ;;  %v704_v3 = vmax.f32 %v702_v15, %v703_v16  ;;  %v761_v59 = vmul.f32 %v1963_v55, %v1963_v55 }
  0xe3   : > { %v869_v4 = vrot.slane %v862_v0, %v831_v60  ;;  %v680_v22 = vmax.f32 %v678_v19, %v679_v20  ;;  %v730_v27 = vmax.f32 %v728_v25, %v729_v26  ;;  %v755_v61 = vmul.f32 %v1949_v32, %v1949_v32 }
  0xe4   : > { %v832_v2 = vrot.slane %v825_v63, %v831_v60  ;;  %643 = vmax.xlane.f32.xlu0 %v642_v1  ;;  %v750_v18 = vmul.f32 %v1961_v51, %v1949_v32 }
  0xe5   : > { %v876_v9 = vrot.slane %v869_v4, %v831_v60  ;;  %681 = vmax.xlane.f32.xlu1 %v680_v22 }
  0xe6   : > { %v839_v8 = vrot.slane %v832_v2, %v831_v60 }
  0xe7   : > { %v878_v11 = vadd.f32 %v876_v9, %v847_v6 }
  0xe8   : > { %v841_v10 = vadd.f32 %v839_v8, %v808_v5  ;;  %705 = vmax.xlane.f32.xlu0 %v704_v3 }
  0xe9   : > { %879 = vst.msk [vmem:[#allocation4] sm:$0x3] %vm1968_vm2, %v878_v11  ;;  %731 = vmax.xlane.f32.xlu1 %v730_v27 }
  0xea   : > { %846 = vst.msk [vmem:[#allocation3] sm:$0x3] %vm1968_vm2, %v841_v10 }
 0x16c   : > { %v626_v28 = vpop.xlane.xlu0 %625 }
 0x16d   : > { %v627_v29 = vsub.f32 %v1954_v40, %v626_v28  ;;  %v628_v30 = vsub.f32 %v1957_v41, %v626_v28  ;;  %v662_v31 = vpop.xlane.xlu1 %661 }
 0x16e   : > { %v663_v34 = vsub.f32 %v658_v45, %v662_v31  ;;  %v664_v35 = vsub.f32 %v659_v46, %v662_v31 }
 0x16f   : > { %v629_v36 = vmul.f32 1.442695, %v627_v29  ;;  %v631_v37 = vmul.f32 1.442695, %v628_v30 }
 0x170   : > { %v665_v38 = vmul.f32 1.442695, %v663_v34  ;;  %v667_v39 = vmul.f32 1.442695, %v664_v35 }
 0x171   : > { %1241 = vpow2.f32 %v629_v36  ;;  %v644_v42 = vpop.xlane.xlu0 %643 }
 0x172   : > { %1243 = vpow2.f32 %v631_v37  ;;  %v645_v43 = vsub.f32 %v640_v58, %v644_v42  ;;  %v646_v44 = vsub.f32 %v641_v62, %v644_v42  ;;  %v760_v58 = vmul.f32 %v1961_v51, %v1961_v51  ;;  %v682_v4 = vpop.xlane.xlu1 %681 }
 0x173   : > { %1245 = vpow2.f32 %v665_v38  ;;  %v756_v62 = vmul.f32 %v1951_v33, %v1951_v33  ;;  %v683_v5 = vsub.f32 %v678_v19, %v682_v4  ;;  %v684_v6 = vsub.f32 %v679_v20, %v682_v4 }
 0x174   : > { %1247 = vpow2.f32 %v667_v39  ;;  %v647_v47 = vmul.f32 1.442695, %v645_v43  ;;  %v649_v48 = vmul.f32 1.442695, %v646_v44  ;;  %v762_v1 = vadd.f32 %v761_v59, %v760_v58 }
 0x175   : > { %v706_v41 = vpop.xlane.xlu0 %705  ;;  %v757_v2 = vadd.f32 %v756_v62, %v755_v61  ;;  %v685_v8 = vmul.f32 1.442695, %v683_v5  ;;  %v687_v9 = vmul.f32 1.442695, %v684_v6  ;;  %v751_v19 = vmul.f32 %v1963_v55, %v1951_v33 }
 0x176   : > { %1249 = vpow2.f32 %v647_v47  ;;  %v1994_v46 = vsub.f32 %v702_v15, %v706_v41  ;;  %v1996_v49 = vsub.f32 %v703_v16, %v706_v41  ;;  %v732_v10 = vpop.xlane.xlu1 %731 }
 0x177   : > { %1251 = vpow2.f32 %v649_v48  ;;  %v733_v11 = vsub.f32 %v728_v25, %v732_v10  ;;  %v734_v12 = vsub.f32 %v729_v26, %v732_v10  ;;  %v752_v20 = vadd.f32 %v751_v19, %v750_v18 }
 0x178   : > { %v709_v54 = vmul.f32 1.442695, %v1994_v46  ;;  %v711_v56 = vmul.f32 1.442695, %v1996_v49 }
 0x179   : > { %v735_v16 = vmul.f32 1.442695, %v733_v11  ;;  %v737_v3 = vmul.f32 1.442695, %v734_v12 }
 0x17a   : > { %1253 = vpow2.f32 %v709_v54 }
 0x17b   : > { %v1990_v40 = vpop.eup %1241  ;;  %1255 = vpow2.f32 %v711_v56 }
 0x17c   : > { %v1992_v45 = vpop.eup %1243  ;;  %1257 = vpow2.f32 %v685_v8 }
 0x17d   : > { %v1998_v50 = vpop.eup %1245  ;;  %v633_v52 = vadd.f32 %v1992_v45, %v1990_v40  ;;  %1259 = vpow2.f32 %v687_v9 }
 0x17e   : > { %v2002_v53 = vpop.eup %1247  ;;  %1261 = vpow2.f32 %v735_v16 }
 0x17f   : > { %634 = vadd.xlane.f32.xlu0 %v633_v52  ;;  %v669_v57 = vadd.f32 %v2002_v53, %v1998_v50  ;;  %1263 = vpow2.f32 %v737_v3 }
 0x180   : > { %v1250_v60 = vpop.eup %1249 }
 0x181   : > { %v1252_v63 = vpop.eup %1251 }
 0x182   : > { %v651_v0 = vadd.f32 %v1252_v63, %v1250_v60 }
 0x183   : > { %670 = vadd.xlane.f32.xlu0 %v669_v57 }
 0x184   : > { %652 = vadd.xlane.f32.xlu1 %v651_v0  ;;  %v1254_v13 = vpop.eup %1253 }
 0x185   : > { %v1256_v15 = vpop.eup %1255 }
 0x186   : > { %v713_v17 = vadd.f32 %v1256_v15, %v1254_v13  ;;  %v1258_v22 = vpop.eup %1257 }
 0x187   : > { %763 = vadd.xlane.f32.xlu0 %v762_v1  ;;  %v1260_v23 = vpop.eup %1259 }
 0x188   : > { %758 = vadd.xlane.f32.xlu1 %v757_v2  ;;  %v689_v24 = vadd.f32 %v1260_v23, %v1258_v22  ;;  %v1262_v25 = vpop.eup %1261 }
 0x189   : > { %v1264_v26 = vpop.eup %1263 }
 0x18a   : > { %v739_v27 = vadd.f32 %v1264_v26, %v1262_v25 }
 0x18b   : > { %714 = vadd.xlane.f32.xlu0 %v713_v17 }
 0x18c   : > { %690 = vadd.xlane.f32.xlu1 %v689_v24 }
 0x18f   : > { %753 = vadd.xlane.f32.xlu0 %v752_v20 }
 0x190   : > { %740 = vadd.xlane.f32.xlu1 %v739_v27 }
 0x20c   : > { %v635_v28 = vpop.xlane.xlu0 %634 }
 0x20d   : > { %1265 = vrcp.f32 %v635_v28 }
 0x210   : > { %v671_v29 = vpop.xlane.xlu0 %670 }
 0x211   : > { %v653_v30 = vpop.xlane.xlu1 %652  ;;  %1267 = vrcp.f32 %v671_v29 }
 0x212   : > { %1269 = vrcp.f32 %v653_v30 }
 0x217   : > { %v1266_v32 = vpop.eup %1265 }
 0x218   : > { %v638_v51 = vmul.f32 %v1266_v32, %v1990_v40  ;;  %v639_v33 = vmul.f32 %v1266_v32, %v1992_v45  ;;  %v764_v45 = vpop.xlane.xlu0 %763 }
 0x219   : > { %1271 = vrsqrt.f32 %v764_v45  ;;  %vm775_vm4 = vcmp.eq.f32.partialorder %v764_v45, inf  ;;  %vm777_vm6 = vcmp.eq.f32.partialorder %v764_v45, 0.0 }
 0x21a   : > { %v718_v55 = vmul.f32 %v1994_v46, %v638_v51  ;;  %v719_v31 = vmul.f32 %v1996_v49, %v639_v33  ;;  %v759_v46 = vpop.xlane.xlu1 %758 }
 0x21b   : > { %v1268_v34 = vpop.eup %1267  ;;  %1273 = vrsqrt.f32 %v759_v46  ;;  %vm767_vm3 = vcmp.eq.f32.partialorder %v759_v46, inf  ;;  %vm769_vm5 = vcmp.eq.f32.partialorder %v759_v46, 0.0 }
 0x21c   : > { %v1270_v35 = vpop.eup %1269  ;;  %v720_v36 = vadd.f32 %v719_v31, %v718_v55  ;;  %v674_v39 = vmul.f32 %v1268_v34, %v1998_v50  ;;  %v675_v42 = vmul.f32 %v1268_v34, %v2002_v53  ;;  %v770_v50 = vand.u32 2147483648, %v759_v46  ;;  %v715_v1 = vpop.xlane.xlu0 %714 }
 0x21d   : > { %v656_v37 = vmul.f32 %v1270_v35, %v1250_v60  ;;  %v657_v38 = vmul.f32 %v1270_v35, %v1252_v63  ;;  %v778_v53 = vand.u32 2147483648, %v764_v45 }
 0x21e   : > { %721 = vadd.xlane.f32.xlu0 %v720_v36  ;;  %v744_v48 = vmul.f32 %v733_v11, %v674_v39  ;;  %v745_v40 = vmul.f32 %v734_v12, %v675_v42  ;;  %v691_v0 = vpop.xlane.xlu1 %690  ;;  %v792_v36 = vld [vmem:[#allocation2] sm:$0x1]  ;;  %v887_v42 = vld [vmem:[#allocation3] sm:$0x3] (!%p1137_p11) }
 0x21f   : > { %v694_v43 = vmul.f32 %v683_v5, %v656_v37  ;;  %v695_v44 = vmul.f32 %v684_v6, %v657_v38 }
 0x220   : > { %v746_v41 = vadd.f32 %v745_v40, %v744_v48  ;;  %v754_v5 = vpop.xlane.xlu0 %753  ;;  %v889_v48 = vld [vmem:[#allocation4] sm:$0x3] (!%p1137_p11) }
 0x221   : > { %v696_v47 = vadd.f32 %v695_v44, %v694_v43  ;;  %v888_v44 = vmul.f32 (!%p1137_p11), 0.03125, %v887_v42  ;;  %v890_v40 = vmul.f32 (!%p1137_p11), 0.0625, %v889_v48 }
 0x222   : > { %v741_v2 = vpop.xlane.xlu1 %740 }
 0x223   : > { %697 = vadd.xlane.f32.xlu1 %v696_v47  ;;  %v1272_v49 = vpop.eup %1271  ;;  %v891_v47 = vmul.f32 (!%p1137_p11), 0.9, %v1938_v14 }
 0x224   : > { %v774_v56 = vmul.f32 %v1272_v49, %v764_v45 }
 0x225   : > { %v1274_v52 = vpop.eup %1273 }
 0x226   : > { %v766_v54 = vmul.f32 %v1274_v52, %v759_v46  ;;  %v776_v58 = vsel %vm775_vm4, %v764_v45, %v774_v56  ;;  %v892_v45 = vmul.f32 (!%p1137_p11), 0.1, %v888_v44 }
 0x227   : > { %747 = vadd.xlane.f32.xlu1 %v746_v41  ;;  %v779_v60 = vsel %vm777_vm6, %v778_v53, %v776_v58  ;;  %v895_v41 = vmul.f32 (!%p1137_p11), 0.9, %v1943_v21 }
 0x228   : > { %v768_v57 = vsel %vm767_vm3, %v759_v46, %v766_v54  ;;  %v780_v62 = vmax.f32 %v779_v60, 1e-08  ;;  %v896_v46 = vmul.f32 (!%p1137_p11), 0.1, %v890_v40  ;;  %v893_v49 = vadd.f32 (!%p1137_p11), %v892_v45, %v891_v47 }
 0x229   : > { %v771_v59 = vsel %vm769_vm5, %v770_v50, %v768_v57 }
 0x22a   : > { %v772_v61 = vmax.f32 %v771_v59, 1e-08  ;;  %v897_v52 = vadd.f32 (!%p1137_p11), %v896_v46, %v895_v41  ;;  %894 = vst.msk [vmem:[#allocation18] sm:$0x3] (!%p1137_p11), %vm1968_vm2, %v893_v49 }
 0x22c   : > { %v781_v63 = vmul.f32 %v780_v62, %v772_v61  ;;  %898 = vst.msk [vmem:[#allocation20] sm:$0x3] (!%p1137_p11), %vm1968_vm2, %v897_v52 }
 0x22e   : > { %1275 = vrcp.f32 %v781_v63 }
 0x22f   : > { %1277 = vlog2.f32 %v715_v1 }
 0x230   : > { %1279 = vlog2.f32 %v691_v0 }
 0x231   : > { %1281 = vlog2.f32 %v741_v2 }
 0x238   : > { %v1276_v4 = vpop.eup %1275 }
 0x239   : > { %v784_v6 = vmul.f32 %v1276_v4, %v754_v5  ;;  %v1278_v8 = vpop.eup %1277 }
 0x23a   : > { %v1280_v10 = vpop.eup %1279  ;;  %v717_v12 = vmul.f32 0.6931472, %v1278_v8 }
 0x23b   : > { %v785_v9 = vadd.f32 1.0, %v784_v6  ;;  %v693_v13 = vmul.f32 0.6931472, %v1280_v10  ;;  %v1282_v15 = vpop.eup %1281 }
 0x23c   : > { %v743_v20 = vmul.f32 0.6931472, %v1282_v15 }
 0x23d   : > { %v786_v11 = vmul.f32 0.5, %v785_v9 }
 0x23f   : > { %v787_v17 = vmul.f32 %v786_v11, %v786_v11 }
 0x241   : > { %v789_v24 = vsub.f32 1.0, %v787_v17 }
 0x2ab   : > { %v722_v16 = vpop.xlane.xlu0 %721 }
 0x2ac   : > { %v723_v18 = vsub.f32 %v717_v12, %v722_v16 }
 0x2b0   : > { %v698_v3 = vpop.xlane.xlu1 %697 }
 0x2b1   : > { %v699_v19 = vsub.f32 %v693_v13, %v698_v3 }
 0x2b3   : > { %v724_v22 = vadd.f32 %v723_v18, %v699_v19 }
 0x2b4   : > { %v748_v23 = vpop.xlane.xlu1 %747 }
 0x2b5   : > { %v725_v25 = vmul.f32 0.5, %v724_v22  ;;  %v749_v26 = vsub.f32 %v743_v20, %v748_v23 }
 0x2b7   : > { %v790_v27 = vmul.f32 %v789_v24, %v749_v26  ;;  %v788_v28 = vmul.f32 %v787_v17, %v725_v25 }
 0x2b9   : > { %v791_v29 = vadd.f32 %v790_v27, %v788_v28 }
 0x2bb   : > { %v794_v30 = vsel %vm793_vm7, %v791_v29, 0.0 }
 0x2bc   : > { %795 = vadd.xlane.f32.xlu0 %v794_v30 }
 0x349   : > { %v796_v32 = vpop.xlane.xlu0 %795 }
 0x34a   : > { %v797_v51 = vrot.slane %v796_v32, 4 }
 0x34c   : > { %v798_v33 = vadd.f32 %v797_v51, %v796_v32 }
 0x34e   : > { %v799_v55 = vrot.slane %v798_v33, 2 }
 0x350   : > { %v800_v31 = vadd.f32 %v799_v55, %v798_v33 }
 0x352   : > { %v801_v34 = vrot.slane %v800_v31, 1 }
 0x354   : > { %v802_v35 = vadd.f32 %v801_v34, %v800_v31 }
 0x356   : > { %1152 = vpush %v802_v35 }
 0x385   : > { %883 = sbr.rel (%p1137_p11) target bundleno = 918 (0x396), region = 88 }
 0x387   : > { %s1153_s29 = spop %1152 }
 0x388   : > { %v804_v37 = vstv %s1153_s29 }
 0x389   : > { %v805_v38 = vadd.f32 %v804_v37, %v792_v36 }
 0x38b   : > { %807 = vst.msk [vmem:[#allocation2] sm:$0x1] %vm806_vm8, %v805_v38 }
 0x392   : > { %v884_v39 = vld [vmem:[#allocation2] sm:$0x1] }
 0x393   : > { %v885_v43 = vmul.f32 0.0625, %v884_v39 }
 0x395   : > { %886 = vst.msk [vmem:[#allocation17] sm:$0x1] %vm806_vm8, %v885_v43 }
 0x396 PF: > { %p1198_p6 = scmp.eq.s32.totalorder %s1690_s0, 1  ;;  %s1605_s4 = smov [#allocation18]  }
 0x397   : > { %s917_s11 = sshll.u32 %s1605_s4, 4  ;;  %s1606_s25 = smov [#allocation17]   ;;  %s918_s11 = int_to_ptr.vmem [resolvable:$true] %s917_s11 }
 0x398   : > { %s906_s23 = sshll.u32 %s1606_s25, 4  ;;  %s1463_s18 = scalar_lea.vmem %s918_s11, 32  ;;  %s907_s23 = int_to_ptr.vmem [resolvable:$true] %s906_s23 }
 0x399   : > { %p1464_p10 = scmp.ne.s32.totalorder %s918_s11, %s1463_s18  ;;  %p1470_p1 = scmp.lt.s32.totalorder %s918_s11, %s918_s11 }
 0x39a   : > { %p1471_p7 = scmp.lt.s32.totalorder %s1463_s18, %s1463_s18 }
 0x39b   : > { %p1465_p0 = pnand %p1464_p10, %p1198_p6 }
 0x39c   : > { %p1472_p2 = por %p1471_p7, %p1470_p1 }
 0x39d   : > { %p1466_p13 = pneg %p1465_p0 }
 0x39f   : > { %p1473_p3 = pnand %p1472_p2, %p1466_p13 }
 0x3a1   : > { %1476 = shalt.err (!%p1473_p3)
}
 0x3a2   : > { %s1477_s21 = scalar_lea.hbm %s2119_s10, 32 }
 0x3a3   : > { %p1478_p4 = scmp.ne.s32.totalorder %s2119_s10, %s1477_s21  ;;  %p1483_p12 = scmp.lt.u32.totalorder %s1477_s21, %s2119_s10 }
 0x3a5   : > { %p1479_p8 = pnand %p1478_p4, %p1198_p6 }
 0x3a7   : > { %p1480_p5 = pneg %p1479_p8 }
 0x3a9   : > { %p1485_p9 = pnand %p1483_p12, %p1480_p5 }
 0x3ab   : > { %1488 = shalt.err (!%p1485_p9)
}
 0x3ac   : > { %1169 = dma.vmem_to_hbm [thread:$0]  (%p1198_p6), %s918_s11, 32, %s2119_s10, [#allocation19]  }
 0x3ad   : > { %s1489_s16 = scalar_lea.vmem %s907_s23, 16  ;;  %s1495_s13 = scalar_lea.vmem %s907_s23, 32 }
 0x3ae   : > { %p1490_p11 = scmp.ne.s32.totalorder %s907_s23, %s1489_s16  ;;  %p1496_p13 = scmp.lt.s32.totalorder %s907_s23, %s907_s23 }
 0x3af   : > { %p1497_p1 = scmp.lt.s32.totalorder %s1495_s13, %s1489_s16 }
 0x3b0   : > { %p1491_p10 = pnand %p1490_p11, %p1198_p6 }
 0x3b1   : > { %p1498_p7 = por %p1497_p1, %p1496_p13 }
 0x3b2   : > { %p1492_p0 = pneg %p1491_p10 }
 0x3b4   : > { %p1499_p2 = pnand %p1498_p7, %p1492_p0 }
 0x3b6   : > { %1502 = shalt.err (!%p1499_p2)
}
 0x3b7   : > { %s1503_s30 = scalar_lea.hbm %s2118_s9, 16 }
 0x3b8   : > { %p1504_p3 = scmp.ne.s32.totalorder %s2118_s9, %s1503_s30  ;;  %p1509_p5 = scmp.lt.u32.totalorder %s1503_s30, %s2118_s9 }
 0x3ba   : > { %p1505_p4 = pnand %p1504_p3, %p1198_p6 }
 0x3bc   : > { %p1506_p8 = pneg %p1505_p4 }
 0x3be   : > { %p1511_p12 = pnand %p1509_p5, %p1506_p8 }
 0x3c0   : > { %1514 = shalt.err (!%p1511_p12)
}
 0x3c1   : > { %1167 = dma.vmem_to_hbm [thread:$0]  (%p1198_p6), %s907_s23, 16, %s2118_s9, [#allocation8]  }
 0x3c2   : > { %s1607_s22 = smov [#allocation20]  }
 0x3c3   : > { %s928_s12 = sshll.u32 %s1607_s22, 4  ;;  %s929_s12 = int_to_ptr.vmem [resolvable:$true] %s928_s12 }
 0x3c4   : > { %s1515_s21 = scalar_lea.vmem %s929_s12, 32  ;;  %p1522_p0 = scmp.lt.s32.totalorder %s929_s12, %s929_s12 }
 0x3c5   : > { %p1516_p9 = scmp.ne.s32.totalorder %s929_s12, %s1515_s21  ;;  %p1523_p13 = scmp.lt.s32.totalorder %s1515_s21, %s1515_s21 }
 0x3c7   : > { %p1517_p11 = pnand %p1516_p9, %p1198_p6  ;;  %p1524_p1 = por %p1523_p13, %p1522_p0 }
 0x3c9   : > { %p1518_p10 = pneg %p1517_p11 }
 0x3cb   : > { %p1525_p7 = pnand %p1524_p1, %p1518_p10 }
 0x3cd   : > { %1528 = shalt.err (!%p1525_p7)
}
 0x3ce   : > { %s2153_s19 = sld [smem:[#allocation32_spill]] }
 0x3d4   : > { %s2154_s15 = smov %s2153_s19  ;;  %s1529_s2 = scalar_lea.hbm %s2153_s19, 32 }
 0x3d5   : > { %p1530_p2 = scmp.ne.s32.totalorder %s2154_s15, %s1529_s2  ;;  %p1535_p8 = scmp.lt.u32.totalorder %s1529_s2, %s2154_s15 }
 0x3d7   : > { %p1531_p3 = pnand %p1530_p2, %p1198_p6 }
 0x3d9   : > { %p1532_p4 = pneg %p1531_p3 }
 0x3db   : > { %p1537_p5 = pnand %p1535_p8, %p1532_p4 }
 0x3dd   : > { %1540 = shalt.err (!%p1537_p5)
}
 0x3de   : > { %1171 = dma.vmem_to_hbm [thread:$0]  (%p1198_p6), %s929_s12, 32, %s2154_s15, [#allocation19]  }
 0x3df   : > { %1574 = dma.done.wait (%p1198_p6), [#allocation8], 16  }
 0x3e0   : > { %1576 = vsyncadd (%p1198_p6), [#allocation8], 4294967280 }
 0x3e1   : > { %1578 = dma.done.wait (%p1198_p6), [#allocation19], 64  }
 0x3e2   : > { %1580 = vsyncadd (%p1198_p6), [#allocation19], 4294967232 }
 0x3e3 PF: > { %s2155_s22 = sld [smem:[#allocation28_spill]]  ;;  %s2156_s30 = sld [smem:[#allocation27_spill]] }
 0x3e4   : > { %s2157_s21 = sld [smem:[#allocation29_spill]]  ;;  %s2158_s19 = smov %s1587_s20 }
 0x3e9   : > { %p34_p12 = scmp.ge.s32.totalorder %s2155_s22, 4   ;;  %s2159_s20 = smov %s2156_s30 }
 0x3eb   :  { %36 = sbr.rel (!%p34_p12) target bundleno = 16 (0x10), region = 178 }
 0x3f2   :  { %949 = vsyncpa [#allocation7], 1 }
 0x3f3   :  { %951 = vsyncpa [#allocation7 + $0x1], 1 }
 0x3f4   :  { %952 = vsyncpa [#allocation10], 1 }
 0x3f5   :  { %954 = vsyncpa [#allocation10 + $0x1], 1 }
 0x3f6   :  { %955 = vsyncpa [#allocation13], 1 }
 0x3f7   :  { %957 = vsyncpa [#allocation13 + $0x1], 1 }
 0x3f8   :  { %958 = vsyncpa [#allocation16], 1 }
 0x3f9   :  { %960 = vsyncpa [#allocation16 + $0x1], 1 }
 0x3fa   :  { %961 = vsyncpa [#allocation8], 1 }
 0x3fb   :  { %963 = vsyncpa [#allocation8 + $0x1], 1 }
 0x3fc   :  { %964 = vsyncpa [#allocation19], 1 }

</bundles_post_ra>
